<compile_context>
chip_gen: v5e
topology: v5e:2x2
jax: 0.10.0
libtpu: 0.0.40
codegen_flags: <defaults>
</compile_context>

<pallas_src>
import math

import jax
import jax.numpy as jnp
from jax.experimental import pallas as pl
from jax.experimental.pallas import tpu as pltpu

# ----------------------------- tiny BERT config -----------------------------
VOCAB = 64
MAX_POS = 16
HIDDEN = 32
NUM_LAYERS = 2
NUM_HEADS = 4
HEAD_DIM = HIDDEN // NUM_HEADS
INTERMEDIATE = 64
NUM_VAGUENESS = 3
NUM_READABILITY = 5
NUM_OUT = NUM_VAGUENESS + NUM_READABILITY
LN_EPS = 1e-12

BATCH = 2
SEQ = 8
ROWS = BATCH * SEQ                      # flattened (B*S) activation rows
OUT_PAD = 128                           # lane-dense classifier output width

# ------------------------- packed weight buffer layout -----------------------
# One flat (N_ROWS, 128) f32 buffer; every section starts on an 8-row boundary.
WORD_OFF = 0                                          # (VOCAB, H)
POSTYPE_OFF = WORD_OFF + VOCAB                        # (ROWS, H) pos+type addend
WHEAD_OFF = POSTYPE_OFF + ROWS                        # (H, 128) padded classifier
WQKV_OFF = WHEAD_OFF + HIDDEN                         # per layer: (H, 3H)
WO_OFF = WQKV_OFF + NUM_LAYERS * HIDDEN               # per layer: (H, H)
W1_OFF = WO_OFF + NUM_LAYERS * HIDDEN                 # per layer: (H, I)
W2_OFF = W1_OFF + NUM_LAYERS * HIDDEN                 # per layer: (I, H)
GLOB_OFF = W2_OFF + NUM_LAYERS * INTERMEDIATE         # 8 rows of global vectors
BHEAD_ROW = GLOB_OFF + 0                              # (8,) padded to 128
EMB_G_ROW = GLOB_OFF + 1                              # (H,)
EMB_B_ROW = GLOB_OFF + 2                              # (H,)
LVEC_OFF = GLOB_OFF + 8                               # 8 rows per layer:
#   +0 bqkv(3H)  +1 bo(H)  +2 ln1_g(H)  +3 ln1_b(H)
#   +4 b1(I)     +5 b2(H)  +6 ln2_g(H)  +7 ln2_b(H)
N_ROWS = LVEC_OFF + NUM_LAYERS * 8                    # = 456


# --------------------------------- kernel -----------------------------------
def bert_kernel(ids_ref, mask_ref, wbuf_ref, out_ref):
    B, _, S = mask_ref.shape                          # (B, 1, S)
    R = B * S
    H = HIDDEN
    HD = HEAD_DIM
    I = INTERMEDIATE

    def mat(off, rows, cols):                         # static ref slice -> value
        return wbuf_ref[off:off + rows, :cols]

    def vec(row, cols):                               # single packed row
        return wbuf_ref[row, :cols]

    def layer_norm(v, g, b):
        mu = jnp.mean(v, axis=-1, keepdims=True)
        ms = jnp.mean(v * v, axis=-1, keepdims=True)  # one-pass variance
        var = ms - mu * mu
        return (v - mu) * jax.lax.rsqrt(var + LN_EPS) * g + b

    # ---- embeddings: in-kernel one-hot gather + precomputed pos/type addend ----
    ids = ids_ref[...]                                                   # (R, 1) int32
    one_hot = (ids == jax.lax.broadcasted_iota(jnp.int32, (R, VOCAB), 1)
               ).astype(jnp.float32)                                     # (R, VOCAB)
    x = jnp.dot(one_hot, mat(WORD_OFF, VOCAB, H),
                preferred_element_type=jnp.float32)                      # (R, H)
    x = x + mat(POSTYPE_OFF, R, H)
    x = layer_norm(x, vec(EMB_G_ROW, H), vec(EMB_B_ROW, H))

    # ---- additive attention mask, broadcast ONCE (JAX does not CSE broadcasts) ----
    mask = mask_ref[...].astype(jnp.float32)                             # (B, 1, S)
    mask_b = jnp.broadcast_to((1.0 - mask) * -10000.0, (B, S, S))

    for l in range(NUM_LAYERS):
        base = LVEC_OFF + 8 * l

        # fused QKV projection (1/sqrt(HD) scale already folded into wq / bq)
        qkv = jnp.dot(x, mat(WQKV_OFF + H * l, H, 3 * H),
                      preferred_element_type=jnp.float32) + vec(base + 0, 3 * H)
        qkv3 = qkv.reshape(B, S, 3 * H)               # sublane-tile aligned split

        # multi-head self-attention; accumulate head @ wo-slice (no lane concat)
        attn = jnp.zeros((R, H), jnp.float32)
        for h in range(NUM_HEADS):
            qh = qkv3[:, :, h * HD:(h + 1) * HD]                         # (B, S, HD)
            kh = qkv3[:, :, H + h * HD:H + (h + 1) * HD]
            vh = qkv3[:, :, 2 * H + h * HD:2 * H + (h + 1) * HD]
            sc = jnp.einsum('bqd,bkd->bqk', qh, kh,
                            preferred_element_type=jnp.float32) + mask_b
            m = jnp.max(sc, axis=-1, keepdims=True)
            e = jnp.exp(sc - m)
            p = e * pl.reciprocal(jnp.sum(e, axis=-1, keepdims=True), approx=True)
            head = jnp.einsum('bqk,bkd->bqd', p, vh,
                              preferred_element_type=jnp.float32)        # (B, S, HD)
            wo_h = mat(WO_OFF + H * l + HD * h, HD, H)                   # (HD, H)
            attn = attn + jnp.dot(head.reshape(R, HD), wo_h,
                                  preferred_element_type=jnp.float32)
        attn = attn + vec(base + 1, H)
        x = layer_norm(x + attn, vec(base + 2, H), vec(base + 3, H))

        # feed-forward
        hmid = jnp.dot(x, mat(W1_OFF + H * l, H, I),
                       preferred_element_type=jnp.float32) + vec(base + 4, I)
        hmid = jax.nn.gelu(hmid, approximate=True)  # TODO(synk): HF BERT uses erf-gelu; tanh approx used here
        ffn = jnp.dot(hmid, mat(W2_OFF + I * l, I, H),
                      preferred_element_type=jnp.float32) + vec(base + 5, H)
        x = layer_norm(x + ffn, vec(base + 6, H), vec(base + 7, H))

    # ---- fused classifier heads: lane-dense (R, 128) store, wrapper slices ----
    logits = jnp.dot(x, mat(WHEAD_OFF, H, OUT_PAD),
                     preferred_element_type=jnp.float32) + vec(BHEAD_ROW, OUT_PAD)
    out_ref[...] = logits.astype(out_ref.dtype)


# ------------------------ pack weights once at init --------------------------
def pack_params(p):
    H, I, L = HIDDEN, INTERMEDIATE, NUM_LAYERS
    scale = 1.0 / math.sqrt(HEAD_DIM)
    buf = jnp.zeros((N_ROWS, 128), jnp.float32)

    def put(b, row, a):
        a = jnp.asarray(a, jnp.float32)
        if a.ndim == 1:
            a = a[None, :]
        return b.at[row:row + a.shape[0], :a.shape[1]].set(a)

    buf = put(buf, WORD_OFF, p["word_emb"])
    pos_type = jnp.tile(p["pos_emb"][:SEQ], (BATCH, 1)) + p["type_emb"][0][None, :]
    buf = put(buf, POSTYPE_OFF, pos_type)
    buf = put(buf, WHEAD_OFF, jnp.concatenate([p["wvag"], p["wread"]], axis=-1))
    buf = put(buf, BHEAD_ROW, jnp.concatenate([p["bvag"], p["bread"]], axis=-1))
    buf = put(buf, EMB_G_ROW, p["emb_ln_g"])
    buf = put(buf, EMB_B_ROW, p["emb_ln_b"])
    for l in range(L):
        wqkv = jnp.concatenate([p["wq"][l] * scale, p["wk"][l], p["wv"][l]], axis=-1)
        bqkv = jnp.concatenate([p["bq"][l] * scale, p["bk"][l], p["bv"][l]], axis=-1)
        buf = put(buf, WQKV_OFF + H * l, wqkv)
        buf = put(buf, WO_OFF + H * l, p["wo"][l])
        buf = put(buf, W1_OFF + H * l, p["w1"][l])
        buf = put(buf, W2_OFF + I * l, p["w2"][l])
        base = LVEC_OFF + 8 * l
        buf = put(buf, base + 0, bqkv)
        buf = put(buf, base + 1, p["bo"][l])
        buf = put(buf, base + 2, p["ln1_g"][l])
        buf = put(buf, base + 3, p["ln1_b"][l])
        buf = put(buf, base + 4, p["b1"][l])
        buf = put(buf, base + 5, p["b2"][l])
        buf = put(buf, base + 6, p["ln2_g"][l])
        buf = put(buf, base + 7, p["ln2_b"][l])
    return buf


# -------------------------------- wrapper ------------------------------------
@jax.jit
def multilabel_bert_forward(input_ids, attention_mask, wbuf):
    B, S = input_ids.shape
    R = B * S
    ids_col = input_ids.reshape(R, 1).astype(jnp.int32)
    mask_f = attention_mask.astype(jnp.float32).reshape(B, 1, S)

    logits = pl.pallas_call(
        bert_kernel,
        out_shape=jax.ShapeDtypeStruct((R, OUT_PAD), jnp.float32),
        in_specs=[
            pl.BlockSpec(memory_space=pltpu.MemorySpace.VMEM),
            pl.BlockSpec(memory_space=pltpu.MemorySpace.VMEM),
            pl.BlockSpec(memory_space=pltpu.MemorySpace.VMEM),
        ],
        out_specs=pl.BlockSpec(memory_space=pltpu.MemorySpace.VMEM),
    )(ids_col, mask_f, wbuf)

    logits = logits.reshape(B, S, OUT_PAD)
    return logits[..., :NUM_VAGUENESS], logits[..., NUM_VAGUENESS:NUM_OUT]


# --------------------------- deterministic params ----------------------------
def init_params(key):
    def nrm(k, shape):
        return (0.02 * jax.random.normal(k, shape)).astype(jnp.float32)

    keys = jax.random.split(key, 16)
    L, H, I = NUM_LAYERS, HIDDEN, INTERMEDIATE
    p = {
        "word_emb": nrm(keys[0], (VOCAB, H)),
        "pos_emb": nrm(keys[1], (MAX_POS, H)),
        "type_emb": nrm(keys[2], (2, H)),
        "emb_ln_g": jnp.ones((1, H), jnp.float32),
        "emb_ln_b": jnp.zeros((1, H), jnp.float32),
        "wq": nrm(keys[3], (L, H, H)), "bq": jnp.zeros((L, 1, H), jnp.float32),
        "wk": nrm(keys[4], (L, H, H)), "bk": jnp.zeros((L, 1, H), jnp.float32),
        "wv": nrm(keys[5], (L, H, H)), "bv": jnp.zeros((L, 1, H), jnp.float32),
        "wo": nrm(keys[6], (L, H, H)), "bo": jnp.zeros((L, 1, H), jnp.float32),
        "ln1_g": jnp.ones((L, 1, H), jnp.float32), "ln1_b": jnp.zeros((L, 1, H), jnp.float32),
        "w1": nrm(keys[7], (L, H, I)), "b1": jnp.zeros((L, 1, I), jnp.float32),
        "w2": nrm(keys[8], (L, I, H)), "b2": jnp.zeros((L, 1, H), jnp.float32),
        "ln2_g": jnp.ones((L, 1, H), jnp.float32), "ln2_b": jnp.zeros((L, 1, H), jnp.float32),
        "wvag": nrm(keys[9], (H, NUM_VAGUENESS)),
        "bvag": jnp.zeros((1, NUM_VAGUENESS), jnp.float32),
        "wread": nrm(keys[10], (H, NUM_READABILITY)),
        "bread": jnp.zeros((1, NUM_READABILITY), jnp.float32),
    }
    return p


# ----------------------------- pure-JAX reference ----------------------------
def reference_forward(input_ids, attention_mask, p):
    B, S = input_ids.shape
    hp = jax.lax.Precision.HIGHEST

    def ln(v, g, b):
        mu = jnp.mean(v, axis=-1, keepdims=True)
        var = jnp.mean((v - mu) ** 2, axis=-1, keepdims=True)
        return (v - mu) * jax.lax.rsqrt(var + LN_EPS) * g + b

    x = (p["word_emb"][input_ids]
         + p["pos_emb"][jnp.arange(S)][None]
         + p["type_emb"][0][None, None]).astype(jnp.float32)                 # (B, S, H)
    x = ln(x, p["emb_ln_g"], p["emb_ln_b"])
    mask_add = (1.0 - attention_mask.astype(jnp.float32))[:, None, :] * -10000.0  # (B,1,S)
    scale = 1.0 / math.sqrt(HEAD_DIM)

    for l in range(NUM_LAYERS):
        q = jnp.einsum("bsh,hk->bsk", x, p["wq"][l], precision=hp) + p["bq"][l]
        k = jnp.einsum("bsh,hk->bsk", x, p["wk"][l], precision=hp) + p["bk"][l]
        v = jnp.einsum("bsh,hk->bsk", x, p["wv"][l], precision=hp) + p["bv"][l]
        heads = []
        for h in range(NUM_HEADS):
            sl = slice(h * HEAD_DIM, (h + 1) * HEAD_DIM)
            qh, kh, vh = q[..., sl], k[..., sl], v[..., sl]
            sc = jnp.einsum("bqd,bkd->bqk", qh, kh, precision=hp) * scale + mask_add
            pr = jax.nn.softmax(sc, axis=-1)
            heads.append(jnp.einsum("bqk,bkd->bqd", pr, vh, precision=hp))
        ctx = jnp.concatenate(heads, axis=-1)
        attn = jnp.einsum("bsh,hk->bsk", ctx, p["wo"][l], precision=hp) + p["bo"][l]
        x = ln(x + attn, p["ln1_g"][l], p["ln1_b"][l])
        hmid = jax.nn.gelu(jnp.einsum("bsh,hi->bsi", x, p["w1"][l], precision=hp) + p["b1"][l],
                           approximate=True)
        ffn = jnp.einsum("bsi,ih->bsh", hmid, p["w2"][l], precision=hp) + p["b2"][l]
        x = ln(x + ffn, p["ln2_g"][l], p["ln2_b"][l])

    vag = jnp.einsum("bsh,hn->bsn", x, p["wvag"], precision=hp) + p["bvag"]
    read = jnp.einsum("bsh,hn->bsn", x, p["wread"], precision=hp) + p["bread"]
    return vag, read


# ----------------------------------- main ------------------------------------
if __name__ == "__main__":
    key = jax.random.PRNGKey(0)
    kp, ki = jax.random.split(key)
    params = init_params(kp)
    wbuf = jax.block_until_ready(pack_params(params))      # packed once, reused per call

    input_ids = jax.random.randint(ki, (BATCH, SEQ), 0, VOCAB, dtype=jnp.int32)
    attention_mask = jnp.array(
        [[1] * SEQ, [1] * (SEQ - 3) + [0] * 3], dtype=jnp.int32)             # second example padded

    vag_logits, read_logits = multilabel_bert_forward(input_ids, attention_mask, wbuf)
    jax.block_until_ready((vag_logits, read_logits))

    assert vag_logits.shape == (BATCH, SEQ, NUM_VAGUENESS)
    assert read_logits.shape == (BATCH, SEQ, NUM_READABILITY)

    vag_ref, read_ref = reference_forward(input_ids, attention_mask, params)
    assert jnp.allclose(vag_logits, vag_ref, atol=3e-3, rtol=3e-2), \
        f"vagueness mismatch: {jnp.max(jnp.abs(vag_logits - vag_ref))}"
    assert jnp.allclose(read_logits, read_ref, atol=3e-3, rtol=3e-2), \
        f"readability mismatch: {jnp.max(jnp.abs(read_logits - read_ref))}"

    print("KERNEL_OK")
</pallas_src>

<mosaic_0001>
module attributes {stable_mosaic.version = 11 : i64} {
  func.func @bert_kernel(%arg0: memref<16x1xi32, #tpu.memory_space<vmem>>, %arg1: memref<2x1x8xf32, #tpu.memory_space<vmem>>, %arg2: memref<456x128xf32, #tpu.memory_space<vmem>>, %arg3: memref<16x128xf32, #tpu.memory_space<vmem>>) attributes {dimension_semantics = [], scalar_prefetch = 0 : i64, scratch_operands = 0 : i64, tpu.core_type = #tpu.core_type<tc>} {
    %c0 = arith.constant 0 : index
    %c0_0 = arith.constant 0 : index
    %0 = vector.load %arg0[%c0, %c0_0] : memref<16x1xi32, #tpu.memory_space<vmem>>, vector<16x1xi32>
    %1 = tpu.iota {dimensions = array<i32: 1>} : vector<16x64xi32>
    %2 = vector.broadcast %0 : vector<16x1xi32> to vector<16x64xi32>
    %3 = arith.cmpi eq, %2, %1 : vector<16x64xi32>
    %4 = arith.extui %3 : vector<16x64xi1> to vector<16x64xi32>
    %5 = arith.sitofp %4 : vector<16x64xi32> to vector<16x64xf32>
    %c0_1 = arith.constant 0 : index
    %c0_2 = arith.constant 0 : index
    %6 = vector.load %arg2[%c0_1, %c0_2] : memref<456x128xf32, #tpu.memory_space<vmem>>, vector<64x32xf32>
    %cst = arith.constant dense<0.000000e+00> : vector<16x32xf32>
    %7 = tpu.matmul %5, %6, %cst {dimension_numbers = #tpu.dot_dimension_numbers<[1], [0], [0], [1], [0, 0, 1, 1], [], []>} : vector<16x64xf32>, vector<64x32xf32>, vector<16x32xf32> -> vector<16x32xf32>
    %c64 = arith.constant 64 : index
    %c0_3 = arith.constant 0 : index
    %8 = vector.load %arg2[%c64, %c0_3] : memref<456x128xf32, #tpu.memory_space<vmem>>, vector<16x32xf32>
    %9 = arith.addf %7, %8 : vector<16x32xf32>
    %c433 = arith.constant 433 : index
    %c0_4 = arith.constant 0 : index
    %10 = vector.load %arg2[%c433, %c0_4] : memref<456x128xf32, #tpu.memory_space<vmem>>, vector<1x32xf32>
    %11 = vector.shape_cast %10 : vector<1x32xf32> to vector<32xf32>
    %c434 = arith.constant 434 : index
    %c0_5 = arith.constant 0 : index
    %12 = vector.load %arg2[%c434, %c0_5] : memref<456x128xf32, #tpu.memory_space<vmem>>, vector<1x32xf32>
    %13 = vector.shape_cast %12 : vector<1x32xf32> to vector<32xf32>
    %cst_6 = arith.constant dense<0.000000e+00> : vector<16xf32>
    %14 = vector.multi_reduction <add>, %9, %cst_6 [1] : vector<16x32xf32> to vector<16xf32>
    %15 = vector.shape_cast %14 : vector<16xf32> to vector<16x1xf32>
    %cst_7 = arith.constant 3.200000e+01 : f32
    %16 = vector.broadcast %cst_7 : f32 to vector<16x1xf32>
    %17 = arith.divf %15, %16 : vector<16x1xf32>
    %18 = arith.mulf %9, %9 : vector<16x32xf32>
    %cst_8 = arith.constant dense<0.000000e+00> : vector<16xf32>
    %19 = vector.multi_reduction <add>, %18, %cst_8 [1] : vector<16x32xf32> to vector<16xf32>
    %20 = vector.shape_cast %19 : vector<16xf32> to vector<16x1xf32>
    %cst_9 = arith.constant 3.200000e+01 : f32
    %21 = vector.broadcast %cst_9 : f32 to vector<16x1xf32>
    %22 = arith.divf %20, %21 : vector<16x1xf32>
    %23 = arith.mulf %17, %17 : vector<16x1xf32>
    %24 = arith.subf %22, %23 : vector<16x1xf32>
    %25 = vector.broadcast %17 : vector<16x1xf32> to vector<16x32xf32>
    %26 = arith.subf %9, %25 : vector<16x32xf32>
    %cst_10 = arith.constant 9.99999996E-13 : f32
    %27 = vector.broadcast %cst_10 : f32 to vector<16x1xf32>
    %28 = arith.addf %24, %27 : vector<16x1xf32>
    %29 = math.rsqrt %28 : vector<16x1xf32>
    %30 = vector.broadcast %29 : vector<16x1xf32> to vector<16x32xf32>
    %31 = arith.mulf %26, %30 : vector<16x32xf32>
    %32 = vector.shape_cast %11 : vector<32xf32> to vector<1x32xf32>
    %33 = vector.broadcast %32 : vector<1x32xf32> to vector<16x32xf32>
    %34 = arith.mulf %31, %33 : vector<16x32xf32>
    %35 = vector.shape_cast %13 : vector<32xf32> to vector<1x32xf32>
    %36 = vector.broadcast %35 : vector<1x32xf32> to vector<16x32xf32>
    %37 = arith.addf %34, %36 : vector<16x32xf32>
    %c0_11 = arith.constant 0 : index
    %c0_12 = arith.constant 0 : index
    %c0_13 = arith.constant 0 : index
    %38 = vector.load %arg1[%c0_11, %c0_12, %c0_13] : memref<2x1x8xf32, #tpu.memory_space<vmem>>, vector<2x1x8xf32>
    %cst_14 = arith.constant 1.000000e+00 : f32
    %39 = vector.broadcast %cst_14 : f32 to vector<2x1x8xf32>
    %40 = arith.subf %39, %38 : vector<2x1x8xf32>
    %cst_15 = arith.constant -1.000000e+04 : f32
    %41 = vector.broadcast %cst_15 : f32 to vector<2x1x8xf32>
    %42 = arith.mulf %40, %41 : vector<2x1x8xf32>
    %43 = vector.shape_cast %42 : vector<2x1x8xf32> to vector<2x1x8xf32>
    %44 = vector.broadcast %43 : vector<2x1x8xf32> to vector<2x8x8xf32>
    %c112 = arith.constant 112 : index
    %c0_16 = arith.constant 0 : index
    %45 = vector.load %arg2[%c112, %c0_16] : memref<456x128xf32, #tpu.memory_space<vmem>>, vector<32x96xf32>
    %cst_17 = arith.constant dense<0.000000e+00> : vector<16x96xf32>
    %46 = tpu.matmul %37, %45, %cst_17 {dimension_numbers = #tpu.dot_dimension_numbers<[1], [0], [0], [1], [0, 0, 1, 1], [], []>} : vector<16x32xf32>, vector<32x96xf32>, vector<16x96xf32> -> vector<16x96xf32>
    %c440 = arith.constant 440 : index
    %c0_18 = arith.constant 0 : index
    %47 = vector.load %arg2[%c440, %c0_18] : memref<456x128xf32, #tpu.memory_space<vmem>>, vector<1x96xf32>
    %48 = vector.shape_cast %47 : vector<1x96xf32> to vector<96xf32>
    %49 = vector.shape_cast %48 : vector<96xf32> to vector<1x96xf32>
    %50 = vector.broadcast %49 : vector<1x96xf32> to vector<16x96xf32>
    %51 = arith.addf %46, %50 : vector<16x96xf32>
    %52 = vector.shape_cast %51 : vector<16x96xf32> to vector<2x8x96xf32>
    %cst_19 = arith.constant 0.000000e+00 : f32
    %53 = vector.broadcast %cst_19 : f32 to vector<16x32xf32>
    %54 = vector.extract_strided_slice %52 {offsets = [0, 0, 0], sizes = [2, 8, 8], strides = [1, 1, 1]} : vector<2x8x96xf32> to vector<2x8x8xf32>
    %55 = vector.extract_strided_slice %52 {offsets = [0, 0, 32], sizes = [2, 8, 8], strides = [1, 1, 1]} : vector<2x8x96xf32> to vector<2x8x8xf32>
    %56 = vector.extract_strided_slice %52 {offsets = [0, 0, 64], sizes = [2, 8, 8], strides = [1, 1, 1]} : vector<2x8x96xf32> to vector<2x8x8xf32>
    "tpu.trace_start"() <{level = 10 : i32, message = "bqd,bkd->bqk"}> : () -> ()
    %cst_20 = arith.constant dense<0.000000e+00> : vector<2x8x8xf32>
    %57 = tpu.matmul %54, %55, %cst_20 {dimension_numbers = #tpu.dot_dimension_numbers<[2], [2], [1], [1], [0, 0, 0, 1, 1, 1], [0], [0]>} : vector<2x8x8xf32>, vector<2x8x8xf32>, vector<2x8x8xf32> -> vector<2x8x8xf32>
    "tpu.trace_stop"() : () -> ()
    %58 = arith.addf %57, %44 : vector<2x8x8xf32>
    %cst_21 = arith.constant dense<0xFF800000> : vector<2x8xf32>
    %59 = vector.multi_reduction <maximumf>, %58, %cst_21 [2] : vector<2x8x8xf32> to vector<2x8xf32>
    %60 = vector.shape_cast %59 : vector<2x8xf32> to vector<2x8x1xf32>
    %61 = vector.broadcast %60 : vector<2x8x1xf32> to vector<2x8x8xf32>
    %62 = arith.subf %58, %61 : vector<2x8x8xf32>
    %63 = math.exp %62 : vector<2x8x8xf32>
    %cst_22 = arith.constant dense<0.000000e+00> : vector<2x8xf32>
    %64 = vector.multi_reduction <add>, %63, %cst_22 [2] : vector<2x8x8xf32> to vector<2x8xf32>
    %65 = vector.shape_cast %64 : vector<2x8xf32> to vector<2x8x1xf32>
    %66 = tpu.reciprocal %65 {approx = true} : vector<2x8x1xf32> -> vector<2x8x1xf32>
    %67 = vector.broadcast %66 : vector<2x8x1xf32> to vector<2x8x8xf32>
    %68 = arith.mulf %63, %67 : vector<2x8x8xf32>
    "tpu.trace_start"() <{level = 10 : i32, message = "bqk,bkd->bqd"}> : () -> ()
    %cst_23 = arith.constant dense<0.000000e+00> : vector<2x8x8xf32>
    %69 = tpu.matmul %68, %56, %cst_23 {dimension_numbers = #tpu.dot_dimension_numbers<[2], [1], [1], [2], [0, 0, 0, 1, 1, 2], [0], [0]>} : vector<2x8x8xf32>, vector<2x8x8xf32>, vector<2x8x8xf32> -> vector<2x8x8xf32>
    "tpu.trace_stop"() : () -> ()
    %c176 = arith.constant 176 : index
    %c0_24 = arith.constant 0 : index
    %70 = vector.load %arg2[%c176, %c0_24] : memref<456x128xf32, #tpu.memory_space<vmem>>, vector<8x32xf32>
    %71 = vector.shape_cast %69 : vector<2x8x8xf32> to vector<16x8xf32>
    %cst_25 = arith.constant dense<0.000000e+00> : vector<16x32xf32>
    %72 = tpu.matmul %71, %70, %cst_25 {dimension_numbers = #tpu.dot_dimension_numbers<[1], [0], [0], [1], [0, 0, 1, 1], [], []>} : vector<16x8xf32>, vector<8x32xf32>, vector<16x32xf32> -> vector<16x32xf32>
    %73 = arith.addf %53, %72 : vector<16x32xf32>
    %74 = vector.extract_strided_slice %52 {offsets = [0, 0, 8], sizes = [2, 8, 8], strides = [1, 1, 1]} : vector<2x8x96xf32> to vector<2x8x8xf32>
    %75 = vector.extract_strided_slice %52 {offsets = [0, 0, 40], sizes = [2, 8, 8], strides = [1, 1, 1]} : vector<2x8x96xf32> to vector<2x8x8xf32>
    %76 = vector.extract_strided_slice %52 {offsets = [0, 0, 72], sizes = [2, 8, 8], strides = [1, 1, 1]} : vector<2x8x96xf32> to vector<2x8x8xf32>
    "tpu.trace_start"() <{level = 10 : i32, message = "bqd,bkd->bqk"}> : () -> ()
    %cst_26 = arith.constant dense<0.000000e+00> : vector<2x8x8xf32>
    %77 = tpu.matmul %74, %75, %cst_26 {dimension_numbers = #tpu.dot_dimension_numbers<[2], [2], [1], [1], [0, 0, 0, 1, 1, 1], [0], [0]>} : vector<2x8x8xf32>, vector<2x8x8xf32>, vector<2x8x8xf32> -> vector<2x8x8xf32>
    "tpu.trace_stop"() : () -> ()
    %78 = arith.addf %77, %44 : vector<2x8x8xf32>
    %cst_27 = arith.constant dense<0xFF800000> : vector<2x8xf32>
    %79 = vector.multi_reduction <maximumf>, %78, %cst_27 [2] : vector<2x8x8xf32> to vector<2x8xf32>
    %80 = vector.shape_cast %79 : vector<2x8xf32> to vector<2x8x1xf32>
    %81 = vector.broadcast %80 : vector<2x8x1xf32> to vector<2x8x8xf32>
    %82 = arith.subf %78, %81 : vector<2x8x8xf32>
    %83 = math.exp %82 : vector<2x8x8xf32>
    %cst_28 = arith.constant dense<0.000000e+00> : vector<2x8xf32>
    %84 = vector.multi_reduction <add>, %83, %cst_28 [2] : vector<2x8x8xf32> to vector<2x8xf32>
    %85 = vector.shape_cast %84 : vector<2x8xf32> to vector<2x8x1xf32>
    %86 = tpu.reciprocal %85 {approx = true} : vector<2x8x1xf32> -> vector<2x8x1xf32>
    %87 = vector.broadcast %86 : vector<2x8x1xf32> to vector<2x8x8xf32>
    %88 = arith.mulf %83, %87 : vector<2x8x8xf32>
    "tpu.trace_start"() <{level = 10 : i32, message = "bqk,bkd->bqd"}> : () -> ()
    %cst_29 = arith.constant dense<0.000000e+00> : vector<2x8x8xf32>
    %89 = tpu.matmul %88, %76, %cst_29 {dimension_numbers = #tpu.dot_dimension_numbers<[2], [1], [1], [2], [0, 0, 0, 1, 1, 2], [0], [0]>} : vector<2x8x8xf32>, vector<2x8x8xf32>, vector<2x8x8xf32> -> vector<2x8x8xf32>
    "tpu.trace_stop"() : () -> ()
    %c184 = arith.constant 184 : index
    %c0_30 = arith.constant 0 : index
    %90 = vector.load %arg2[%c184, %c0_30] : memref<456x128xf32, #tpu.memory_space<vmem>>, vector<8x32xf32>
    %91 = vector.shape_cast %89 : vector<2x8x8xf32> to vector<16x8xf32>
    %cst_31 = arith.constant dense<0.000000e+00> : vector<16x32xf32>
    %92 = tpu.matmul %91, %90, %cst_31 {dimension_numbers = #tpu.dot_dimension_numbers<[1], [0], [0], [1], [0, 0, 1, 1], [], []>} : vector<16x8xf32>, vector<8x32xf32>, vector<16x32xf32> -> vector<16x32xf32>
    %93 = arith.addf %73, %92 : vector<16x32xf32>
    %94 = vector.extract_strided_slice %52 {offsets = [0, 0, 16], sizes = [2, 8, 8], strides = [1, 1, 1]} : vector<2x8x96xf32> to vector<2x8x8xf32>
    %95 = vector.extract_strided_slice %52 {offsets = [0, 0, 48], sizes = [2, 8, 8], strides = [1, 1, 1]} : vector<2x8x96xf32> to vector<2x8x8xf32>
    %96 = vector.extract_strided_slice %52 {offsets = [0, 0, 80], sizes = [2, 8, 8], strides = [1, 1, 1]} : vector<2x8x96xf32> to vector<2x8x8xf32>
    "tpu.trace_start"() <{level = 10 : i32, message = "bqd,bkd->bqk"}> : () -> ()
    %cst_32 = arith.constant dense<0.000000e+00> : vector<2x8x8xf32>
    %97 = tpu.matmul %94, %95, %cst_32 {dimension_numbers = #tpu.dot_dimension_numbers<[2], [2], [1], [1], [0, 0, 0, 1, 1, 1], [0], [0]>} : vector<2x8x8xf32>, vector<2x8x8xf32>, vector<2x8x8xf32> -> vector<2x8x8xf32>
    "tpu.trace_stop"() : () -> ()
    %98 = arith.addf %97, %44 : vector<2x8x8xf32>
    %cst_33 = arith.constant dense<0xFF800000> : vector<2x8xf32>
    %99 = vector.multi_reduction <maximumf>, %98, %cst_33 [2] : vector<2x8x8xf32> to vector<2x8xf32>
    %100 = vector.shape_cast %99 : vector<2x8xf32> to vector<2x8x1xf32>
    %101 = vector.broadcast %100 : vector<2x8x1xf32> to vector<2x8x8xf32>
    %102 = arith.subf %98, %101 : vector<2x8x8xf32>
    %103 = math.exp %102 : vector<2x8x8xf32>
    %cst_34 = arith.constant dense<0.000000e+00> : vector<2x8xf32>
    %104 = vector.multi_reduction <add>, %103, %cst_34 [2] : vector<2x8x8xf32> to vector<2x8xf32>
    %105 = vector.shape_cast %104 : vector<2x8xf32> to vector<2x8x1xf32>
    %106 = tpu.reciprocal %105 {approx = true} : vector<2x8x1xf32> -> vector<2x8x1xf32>
    %107 = vector.broadcast %106 : vector<2x8x1xf32> to vector<2x8x8xf32>
    %108 = arith.mulf %103, %107 : vector<2x8x8xf32>
    "tpu.trace_start"() <{level = 10 : i32, message = "bqk,bkd->bqd"}> : () -> ()
    %cst_35 = arith.constant dense<0.000000e+00> : vector<2x8x8xf32>
    %109 = tpu.matmul %108, %96, %cst_35 {dimension_numbers = #tpu.dot_dimension_numbers<[2], [1], [1], [2], [0, 0, 0, 1, 1, 2], [0], [0]>} : vector<2x8x8xf32>, vector<2x8x8xf32>, vector<2x8x8xf32> -> vector<2x8x8xf32>
    "tpu.trace_stop"() : () -> ()
    %c192 = arith.constant 192 : index
    %c0_36 = arith.constant 0 : index
    %110 = vector.load %arg2[%c192, %c0_36] : memref<456x128xf32, #tpu.memory_space<vmem>>, vector<8x32xf32>
    %111 = vector.shape_cast %109 : vector<2x8x8xf32> to vector<16x8xf32>
    %cst_37 = arith.constant dense<0.000000e+00> : vector<16x32xf32>
    %112 = tpu.matmul %111, %110, %cst_37 {dimension_numbers = #tpu.dot_dimension_numbers<[1], [0], [0], [1], [0, 0, 1, 1], [], []>} : vector<16x8xf32>, vector<8x32xf32>, vector<16x32xf32> -> vector<16x32xf32>
    %113 = arith.addf %93, %112 : vector<16x32xf32>
    %114 = vector.extract_strided_slice %52 {offsets = [0, 0, 24], sizes = [2, 8, 8], strides = [1, 1, 1]} : vector<2x8x96xf32> to vector<2x8x8xf32>
    %115 = vector.extract_strided_slice %52 {offsets = [0, 0, 56], sizes = [2, 8, 8], strides = [1, 1, 1]} : vector<2x8x96xf32> to vector<2x8x8xf32>
    %116 = vector.extract_strided_slice %52 {offsets = [0, 0, 88], sizes = [2, 8, 8], strides = [1, 1, 1]} : vector<2x8x96xf32> to vector<2x8x8xf32>
    "tpu.trace_start"() <{level = 10 : i32, message = "bqd,bkd->bqk"}> : () -> ()
    %cst_38 = arith.constant dense<0.000000e+00> : vector<2x8x8xf32>
    %117 = tpu.matmul %114, %115, %cst_38 {dimension_numbers = #tpu.dot_dimension_numbers<[2], [2], [1], [1], [0, 0, 0, 1, 1, 1], [0], [0]>} : vector<2x8x8xf32>, vector<2x8x8xf32>, vector<2x8x8xf32> -> vector<2x8x8xf32>
    "tpu.trace_stop"() : () -> ()
    %118 = arith.addf %117, %44 : vector<2x8x8xf32>
    %cst_39 = arith.constant dense<0xFF800000> : vector<2x8xf32>
    %119 = vector.multi_reduction <maximumf>, %118, %cst_39 [2] : vector<2x8x8xf32> to vector<2x8xf32>
    %120 = vector.shape_cast %119 : vector<2x8xf32> to vector<2x8x1xf32>
    %121 = vector.broadcast %120 : vector<2x8x1xf32> to vector<2x8x8xf32>
    %122 = arith.subf %118, %121 : vector<2x8x8xf32>
    %123 = math.exp %122 : vector<2x8x8xf32>
    %cst_40 = arith.constant dense<0.000000e+00> : vector<2x8xf32>
    %124 = vector.multi_reduction <add>, %123, %cst_40 [2] : vector<2x8x8xf32> to vector<2x8xf32>
    %125 = vector.shape_cast %124 : vector<2x8xf32> to vector<2x8x1xf32>
    %126 = tpu.reciprocal %125 {approx = true} : vector<2x8x1xf32> -> vector<2x8x1xf32>
    %127 = vector.broadcast %126 : vector<2x8x1xf32> to vector<2x8x8xf32>
    %128 = arith.mulf %123, %127 : vector<2x8x8xf32>
    "tpu.trace_start"() <{level = 10 : i32, message = "bqk,bkd->bqd"}> : () -> ()
    %cst_41 = arith.constant dense<0.000000e+00> : vector<2x8x8xf32>
    %129 = tpu.matmul %128, %116, %cst_41 {dimension_numbers = #tpu.dot_dimension_numbers<[2], [1], [1], [2], [0, 0, 0, 1, 1, 2], [0], [0]>} : vector<2x8x8xf32>, vector<2x8x8xf32>, vector<2x8x8xf32> -> vector<2x8x8xf32>
    "tpu.trace_stop"() : () -> ()
    %c200 = arith.constant 200 : index
    %c0_42 = arith.constant 0 : index
    %130 = vector.load %arg2[%c200, %c0_42] : memref<456x128xf32, #tpu.memory_space<vmem>>, vector<8x32xf32>
    %131 = vector.shape_cast %129 : vector<2x8x8xf32> to vector<16x8xf32>
    %cst_43 = arith.constant dense<0.000000e+00> : vector<16x32xf32>
    %132 = tpu.matmul %131, %130, %cst_43 {dimension_numbers = #tpu.dot_dimension_numbers<[1], [0], [0], [1], [0, 0, 1, 1], [], []>} : vector<16x8xf32>, vector<8x32xf32>, vector<16x32xf32> -> vector<16x32xf32>
    %133 = arith.addf %113, %132 : vector<16x32xf32>
    %c441 = arith.constant 441 : index
    %c0_44 = arith.constant 0 : index
    %134 = vector.load %arg2[%c441, %c0_44] : memref<456x128xf32, #tpu.memory_space<vmem>>, vector<1x32xf32>
    %135 = vector.shape_cast %134 : vector<1x32xf32> to vector<32xf32>
    %136 = vector.shape_cast %135 : vector<32xf32> to vector<1x32xf32>
    %137 = vector.broadcast %136 : vector<1x32xf32> to vector<16x32xf32>
    %138 = arith.addf %133, %137 : vector<16x32xf32>
    %139 = arith.addf %37, %138 : vector<16x32xf32>
    %c442 = arith.constant 442 : index
    %c0_45 = arith.constant 0 : index
    %140 = vector.load %arg2[%c442, %c0_45] : memref<456x128xf32, #tpu.memory_space<vmem>>, vector<1x32xf32>
    %141 = vector.shape_cast %140 : vector<1x32xf32> to vector<32xf32>
    %c443 = arith.constant 443 : index
    %c0_46 = arith.constant 0 : index
    %142 = vector.load %arg2[%c443, %c0_46] : memref<456x128xf32, #tpu.memory_space<vmem>>, vector<1x32xf32>
    %143 = vector.shape_cast %142 : vector<1x32xf32> to vector<32xf32>
    %cst_47 = arith.constant dense<0.000000e+00> : vector<16xf32>
    %144 = vector.multi_reduction <add>, %139, %cst_47 [1] : vector<16x32xf32> to vector<16xf32>
    %145 = vector.shape_cast %144 : vector<16xf32> to vector<16x1xf32>
    %cst_48 = arith.constant 3.200000e+01 : f32
    %146 = vector.broadcast %cst_48 : f32 to vector<16x1xf32>
    %147 = arith.divf %145, %146 : vector<16x1xf32>
    %148 = arith.mulf %139, %139 : vector<16x32xf32>
    %cst_49 = arith.constant dense<0.000000e+00> : vector<16xf32>
    %149 = vector.multi_reduction <add>, %148, %cst_49 [1] : vector<16x32xf32> to vector<16xf32>
    %150 = vector.shape_cast %149 : vector<16xf32> to vector<16x1xf32>
    %cst_50 = arith.constant 3.200000e+01 : f32
    %151 = vector.broadcast %cst_50 : f32 to vector<16x1xf32>
    %152 = arith.divf %150, %151 : vector<16x1xf32>
    %153 = arith.mulf %147, %147 : vector<16x1xf32>
    %154 = arith.subf %152, %153 : vector<16x1xf32>
    %155 = vector.broadcast %147 : vector<16x1xf32> to vector<16x32xf32>
    %156 = arith.subf %139, %155 : vector<16x32xf32>
    %cst_51 = arith.constant 9.99999996E-13 : f32
    %157 = vector.broadcast %cst_51 : f32 to vector<16x1xf32>
    %158 = arith.addf %154, %157 : vector<16x1xf32>
    %159 = math.rsqrt %158 : vector<16x1xf32>
    %160 = vector.broadcast %159 : vector<16x1xf32> to vector<16x32xf32>
    %161 = arith.mulf %156, %160 : vector<16x32xf32>
    %162 = vector.shape_cast %141 : vector<32xf32> to vector<1x32xf32>
    %163 = vector.broadcast %162 : vector<1x32xf32> to vector<16x32xf32>
    %164 = arith.mulf %161, %163 : vector<16x32xf32>
    %165 = vector.shape_cast %143 : vector<32xf32> to vector<1x32xf32>
    %166 = vector.broadcast %165 : vector<1x32xf32> to vector<16x32xf32>
    %167 = arith.addf %164, %166 : vector<16x32xf32>
    %c240 = arith.constant 240 : index
    %c0_52 = arith.constant 0 : index
    %168 = vector.load %arg2[%c240, %c0_52] : memref<456x128xf32, #tpu.memory_space<vmem>>, vector<32x64xf32>
    %cst_53 = arith.constant dense<0.000000e+00> : vector<16x64xf32>
    %169 = tpu.matmul %167, %168, %cst_53 {dimension_numbers = #tpu.dot_dimension_numbers<[1], [0], [0], [1], [0, 0, 1, 1], [], []>} : vector<16x32xf32>, vector<32x64xf32>, vector<16x64xf32> -> vector<16x64xf32>
    %c444 = arith.constant 444 : index
    %c0_54 = arith.constant 0 : index
    %170 = vector.load %arg2[%c444, %c0_54] : memref<456x128xf32, #tpu.memory_space<vmem>>, vector<1x64xf32>
    %171 = vector.shape_cast %170 : vector<1x64xf32> to vector<64xf32>
    %172 = vector.shape_cast %171 : vector<64xf32> to vector<1x64xf32>
    %173 = vector.broadcast %172 : vector<1x64xf32> to vector<16x64xf32>
    %174 = arith.addf %169, %173 : vector<16x64xf32>
    %175 = arith.mulf %174, %174 : vector<16x64xf32>
    %176 = arith.mulf %174, %175 : vector<16x64xf32>
    %cst_55 = arith.constant 4.471500e-02 : f32
    %177 = vector.broadcast %cst_55 : f32 to vector<16x64xf32>
    %178 = arith.mulf %177, %176 : vector<16x64xf32>
    %179 = arith.addf %174, %178 : vector<16x64xf32>
    %cst_56 = arith.constant 0.797884583 : f32
    %180 = vector.broadcast %cst_56 : f32 to vector<16x64xf32>
    %181 = arith.mulf %180, %179 : vector<16x64xf32>
    %182 = math.tanh %181 : vector<16x64xf32>
    %cst_57 = arith.constant 1.000000e+00 : f32
    %183 = vector.broadcast %cst_57 : f32 to vector<16x64xf32>
    %184 = arith.addf %183, %182 : vector<16x64xf32>
    %cst_58 = arith.constant 5.000000e-01 : f32
    %185 = vector.broadcast %cst_58 : f32 to vector<16x64xf32>
    %186 = arith.mulf %185, %184 : vector<16x64xf32>
    %187 = arith.mulf %174, %186 : vector<16x64xf32>
    %c304 = arith.constant 304 : index
    %c0_59 = arith.constant 0 : index
    %188 = vector.load %arg2[%c304, %c0_59] : memref<456x128xf32, #tpu.memory_space<vmem>>, vector<64x32xf32>
    %cst_60 = arith.constant dense<0.000000e+00> : vector<16x32xf32>
    %189 = tpu.matmul %187, %188, %cst_60 {dimension_numbers = #tpu.dot_dimension_numbers<[1], [0], [0], [1], [0, 0, 1, 1], [], []>} : vector<16x64xf32>, vector<64x32xf32>, vector<16x32xf32> -> vector<16x32xf32>
    %c445 = arith.constant 445 : index
    %c0_61 = arith.constant 0 : index
    %190 = vector.load %arg2[%c445, %c0_61] : memref<456x128xf32, #tpu.memory_space<vmem>>, vector<1x32xf32>
    %191 = vector.shape_cast %190 : vector<1x32xf32> to vector<32xf32>
    %192 = vector.shape_cast %191 : vector<32xf32> to vector<1x32xf32>
    %193 = vector.broadcast %192 : vector<1x32xf32> to vector<16x32xf32>
    %194 = arith.addf %189, %193 : vector<16x32xf32>
    %195 = arith.addf %167, %194 : vector<16x32xf32>
    %c446 = arith.constant 446 : index
    %c0_62 = arith.constant 0 : index
    %196 = vector.load %arg2[%c446, %c0_62] : memref<456x128xf32, #tpu.memory_space<vmem>>, vector<1x32xf32>
    %197 = vector.shape_cast %196 : vector<1x32xf32> to vector<32xf32>
    %c447 = arith.constant 447 : index
    %c0_63 = arith.constant 0 : index
    %198 = vector.load %arg2[%c447, %c0_63] : memref<456x128xf32, #tpu.memory_space<vmem>>, vector<1x32xf32>
    %199 = vector.shape_cast %198 : vector<1x32xf32> to vector<32xf32>
    %cst_64 = arith.constant dense<0.000000e+00> : vector<16xf32>
    %200 = vector.multi_reduction <add>, %195, %cst_64 [1] : vector<16x32xf32> to vector<16xf32>
    %201 = vector.shape_cast %200 : vector<16xf32> to vector<16x1xf32>
    %cst_65 = arith.constant 3.200000e+01 : f32
    %202 = vector.broadcast %cst_65 : f32 to vector<16x1xf32>
    %203 = arith.divf %201, %202 : vector<16x1xf32>
    %204 = arith.mulf %195, %195 : vector<16x32xf32>
    %cst_66 = arith.constant dense<0.000000e+00> : vector<16xf32>
    %205 = vector.multi_reduction <add>, %204, %cst_66 [1] : vector<16x32xf32> to vector<16xf32>
    %206 = vector.shape_cast %205 : vector<16xf32> to vector<16x1xf32>
    %cst_67 = arith.constant 3.200000e+01 : f32
    %207 = vector.broadcast %cst_67 : f32 to vector<16x1xf32>
    %208 = arith.divf %206, %207 : vector<16x1xf32>
    %209 = arith.mulf %203, %203 : vector<16x1xf32>
    %210 = arith.subf %208, %209 : vector<16x1xf32>
    %211 = vector.broadcast %203 : vector<16x1xf32> to vector<16x32xf32>
    %212 = arith.subf %195, %211 : vector<16x32xf32>
    %cst_68 = arith.constant 9.99999996E-13 : f32
    %213 = vector.broadcast %cst_68 : f32 to vector<16x1xf32>
    %214 = arith.addf %210, %213 : vector<16x1xf32>
    %215 = math.rsqrt %214 : vector<16x1xf32>
    %216 = vector.broadcast %215 : vector<16x1xf32> to vector<16x32xf32>
    %217 = arith.mulf %212, %216 : vector<16x32xf32>
    %218 = vector.shape_cast %197 : vector<32xf32> to vector<1x32xf32>
    %219 = vector.broadcast %218 : vector<1x32xf32> to vector<16x32xf32>
    %220 = arith.mulf %217, %219 : vector<16x32xf32>
    %221 = vector.shape_cast %199 : vector<32xf32> to vector<1x32xf32>
    %222 = vector.broadcast %221 : vector<1x32xf32> to vector<16x32xf32>
    %223 = arith.addf %220, %222 : vector<16x32xf32>
    %c144 = arith.constant 144 : index
    %c0_69 = arith.constant 0 : index
    %224 = vector.load %arg2[%c144, %c0_69] : memref<456x128xf32, #tpu.memory_space<vmem>>, vector<32x96xf32>
    %cst_70 = arith.constant dense<0.000000e+00> : vector<16x96xf32>
    %225 = tpu.matmul %223, %224, %cst_70 {dimension_numbers = #tpu.dot_dimension_numbers<[1], [0], [0], [1], [0, 0, 1, 1], [], []>} : vector<16x32xf32>, vector<32x96xf32>, vector<16x96xf32> -> vector<16x96xf32>
    %c448 = arith.constant 448 : index
    %c0_71 = arith.constant 0 : index
    %226 = vector.load %arg2[%c448, %c0_71] : memref<456x128xf32, #tpu.memory_space<vmem>>, vector<1x96xf32>
    %227 = vector.shape_cast %226 : vector<1x96xf32> to vector<96xf32>
    %228 = vector.shape_cast %227 : vector<96xf32> to vector<1x96xf32>
    %229 = vector.broadcast %228 : vector<1x96xf32> to vector<16x96xf32>
    %230 = arith.addf %225, %229 : vector<16x96xf32>
    %231 = vector.shape_cast %230 : vector<16x96xf32> to vector<2x8x96xf32>
    %cst_72 = arith.constant 0.000000e+00 : f32
    %232 = vector.broadcast %cst_72 : f32 to vector<16x32xf32>
    %233 = vector.extract_strided_slice %231 {offsets = [0, 0, 0], sizes = [2, 8, 8], strides = [1, 1, 1]} : vector<2x8x96xf32> to vector<2x8x8xf32>
    %234 = vector.extract_strided_slice %231 {offsets = [0, 0, 32], sizes = [2, 8, 8], strides = [1, 1, 1]} : vector<2x8x96xf32> to vector<2x8x8xf32>
    %235 = vector.extract_strided_slice %231 {offsets = [0, 0, 64], sizes = [2, 8, 8], strides = [1, 1, 1]} : vector<2x8x96xf32> to vector<2x8x8xf32>
    "tpu.trace_start"() <{level = 10 : i32, message = "bqd,bkd->bqk"}> : () -> ()
    %cst_73 = arith.constant dense<0.000000e+00> : vector<2x8x8xf32>
    %236 = tpu.matmul %233, %234, %cst_73 {dimension_numbers = #tpu.dot_dimension_numbers<[2], [2], [1], [1], [0, 0, 0, 1, 1, 1], [0], [0]>} : vector<2x8x8xf32>, vector<2x8x8xf32>, vector<2x8x8xf32> -> vector<2x8x8xf32>
    "tpu.trace_stop"() : () -> ()
    %237 = arith.addf %236, %44 : vector<2x8x8xf32>
    %cst_74 = arith.constant dense<0xFF800000> : vector<2x8xf32>
    %238 = vector.multi_reduction <maximumf>, %237, %cst_74 [2] : vector<2x8x8xf32> to vector<2x8xf32>
    %239 = vector.shape_cast %238 : vector<2x8xf32> to vector<2x8x1xf32>
    %240 = vector.broadcast %239 : vector<2x8x1xf32> to vector<2x8x8xf32>
    %241 = arith.subf %237, %240 : vector<2x8x8xf32>
    %242 = math.exp %241 : vector<2x8x8xf32>
    %cst_75 = arith.constant dense<0.000000e+00> : vector<2x8xf32>
    %243 = vector.multi_reduction <add>, %242, %cst_75 [2] : vector<2x8x8xf32> to vector<2x8xf32>
    %244 = vector.shape_cast %243 : vector<2x8xf32> to vector<2x8x1xf32>
    %245 = tpu.reciprocal %244 {approx = true} : vector<2x8x1xf32> -> vector<2x8x1xf32>
    %246 = vector.broadcast %245 : vector<2x8x1xf32> to vector<2x8x8xf32>
    %247 = arith.mulf %242, %246 : vector<2x8x8xf32>
    "tpu.trace_start"() <{level = 10 : i32, message = "bqk,bkd->bqd"}> : () -> ()
    %cst_76 = arith.constant dense<0.000000e+00> : vector<2x8x8xf32>
    %248 = tpu.matmul %247, %235, %cst_76 {dimension_numbers = #tpu.dot_dimension_numbers<[2], [1], [1], [2], [0, 0, 0, 1, 1, 2], [0], [0]>} : vector<2x8x8xf32>, vector<2x8x8xf32>, vector<2x8x8xf32> -> vector<2x8x8xf32>
    "tpu.trace_stop"() : () -> ()
    %c208 = arith.constant 208 : index
    %c0_77 = arith.constant 0 : index
    %249 = vector.load %arg2[%c208, %c0_77] : memref<456x128xf32, #tpu.memory_space<vmem>>, vector<8x32xf32>
    %250 = vector.shape_cast %248 : vector<2x8x8xf32> to vector<16x8xf32>
    %cst_78 = arith.constant dense<0.000000e+00> : vector<16x32xf32>
    %251 = tpu.matmul %250, %249, %cst_78 {dimension_numbers = #tpu.dot_dimension_numbers<[1], [0], [0], [1], [0, 0, 1, 1], [], []>} : vector<16x8xf32>, vector<8x32xf32>, vector<16x32xf32> -> vector<16x32xf32>
    %252 = arith.addf %232, %251 : vector<16x32xf32>
    %253 = vector.extract_strided_slice %231 {offsets = [0, 0, 8], sizes = [2, 8, 8], strides = [1, 1, 1]} : vector<2x8x96xf32> to vector<2x8x8xf32>
    %254 = vector.extract_strided_slice %231 {offsets = [0, 0, 40], sizes = [2, 8, 8], strides = [1, 1, 1]} : vector<2x8x96xf32> to vector<2x8x8xf32>
    %255 = vector.extract_strided_slice %231 {offsets = [0, 0, 72], sizes = [2, 8, 8], strides = [1, 1, 1]} : vector<2x8x96xf32> to vector<2x8x8xf32>
    "tpu.trace_start"() <{level = 10 : i32, message = "bqd,bkd->bqk"}> : () -> ()
    %cst_79 = arith.constant dense<0.000000e+00> : vector<2x8x8xf32>
    %256 = tpu.matmul %253, %254, %cst_79 {dimension_numbers = #tpu.dot_dimension_numbers<[2], [2], [1], [1], [0, 0, 0, 1, 1, 1], [0], [0]>} : vector<2x8x8xf32>, vector<2x8x8xf32>, vector<2x8x8xf32> -> vector<2x8x8xf32>
    "tpu.trace_stop"() : () -> ()
    %257 = arith.addf %256, %44 : vector<2x8x8xf32>
    %cst_80 = arith.constant dense<0xFF800000> : vector<2x8xf32>
    %258 = vector.multi_reduction <maximumf>, %257, %cst_80 [2] : vector<2x8x8xf32> to vector<2x8xf32>
    %259 = vector.shape_cast %258 : vector<2x8xf32> to vector<2x8x1xf32>
    %260 = vector.broadcast %259 : vector<2x8x1xf32> to vector<2x8x8xf32>
    %261 = arith.subf %257, %260 : vector<2x8x8xf32>
    %262 = math.exp %261 : vector<2x8x8xf32>
    %cst_81 = arith.constant dense<0.000000e+00> : vector<2x8xf32>
    %263 = vector.multi_reduction <add>, %262, %cst_81 [2] : vector<2x8x8xf32> to vector<2x8xf32>
    %264 = vector.shape_cast %263 : vector<2x8xf32> to vector<2x8x1xf32>
    %265 = tpu.reciprocal %264 {approx = true} : vector<2x8x1xf32> -> vector<2x8x1xf32>
    %266 = vector.broadcast %265 : vector<2x8x1xf32> to vector<2x8x8xf32>
    %267 = arith.mulf %262, %266 : vector<2x8x8xf32>
    "tpu.trace_start"() <{level = 10 : i32, message = "bqk,bkd->bqd"}> : () -> ()
    %cst_82 = arith.constant dense<0.000000e+00> : vector<2x8x8xf32>
    %268 = tpu.matmul %267, %255, %cst_82 {dimension_numbers = #tpu.dot_dimension_numbers<[2], [1], [1], [2], [0, 0, 0, 1, 1, 2], [0], [0]>} : vector<2x8x8xf32>, vector<2x8x8xf32>, vector<2x8x8xf32> -> vector<2x8x8xf32>
    "tpu.trace_stop"() : () -> ()
    %c216 = arith.constant 216 : index
    %c0_83 = arith.constant 0 : index
    %269 = vector.load %arg2[%c216, %c0_83] : memref<456x128xf32, #tpu.memory_space<vmem>>, vector<8x32xf32>
    %270 = vector.shape_cast %268 : vector<2x8x8xf32> to vector<16x8xf32>
    %cst_84 = arith.constant dense<0.000000e+00> : vector<16x32xf32>
    %271 = tpu.matmul %270, %269, %cst_84 {dimension_numbers = #tpu.dot_dimension_numbers<[1], [0], [0], [1], [0, 0, 1, 1], [], []>} : vector<16x8xf32>, vector<8x32xf32>, vector<16x32xf32> -> vector<16x32xf32>
    %272 = arith.addf %252, %271 : vector<16x32xf32>
    %273 = vector.extract_strided_slice %231 {offsets = [0, 0, 16], sizes = [2, 8, 8], strides = [1, 1, 1]} : vector<2x8x96xf32> to vector<2x8x8xf32>
    %274 = vector.extract_strided_slice %231 {offsets = [0, 0, 48], sizes = [2, 8, 8], strides = [1, 1, 1]} : vector<2x8x96xf32> to vector<2x8x8xf32>
    %275 = vector.extract_strided_slice %231 {offsets = [0, 0, 80], sizes = [2, 8, 8], strides = [1, 1, 1]} : vector<2x8x96xf32> to vector<2x8x8xf32>
    "tpu.trace_start"() <{level = 10 : i32, message = "bqd,bkd->bqk"}> : () -> ()
    %cst_85 = arith.constant dense<0.000000e+00> : vector<2x8x8xf32>
    %276 = tpu.matmul %273, %274, %cst_85 {dimension_numbers = #tpu.dot_dimension_numbers<[2], [2], [1], [1], [0, 0, 0, 1, 1, 1], [0], [0]>} : vector<2x8x8xf32>, vector<2x8x8xf32>, vector<2x8x8xf32> -> vector<2x8x8xf32>
    "tpu.trace_stop"() : () -> ()
    %277 = arith.addf %276, %44 : vector<2x8x8xf32>
    %cst_86 = arith.constant dense<0xFF800000> : vector<2x8xf32>
    %278 = vector.multi_reduction <maximumf>, %277, %cst_86 [2] : vector<2x8x8xf32> to vector<2x8xf32>
    %279 = vector.shape_cast %278 : vector<2x8xf32> to vector<2x8x1xf32>
    %280 = vector.broadcast %279 : vector<2x8x1xf32> to vector<2x8x8xf32>
    %281 = arith.subf %277, %280 : vector<2x8x8xf32>
    %282 = math.exp %281 : vector<2x8x8xf32>
    %cst_87 = arith.constant dense<0.000000e+00> : vector<2x8xf32>
    %283 = vector.multi_reduction <add>, %282, %cst_87 [2] : vector<2x8x8xf32> to vector<2x8xf32>
    %284 = vector.shape_cast %283 : vector<2x8xf32> to vector<2x8x1xf32>
    %285 = tpu.reciprocal %284 {approx = true} : vector<2x8x1xf32> -> vector<2x8x1xf32>
    %286 = vector.broadcast %285 : vector<2x8x1xf32> to vector<2x8x8xf32>
    %287 = arith.mulf %282, %286 : vector<2x8x8xf32>
    "tpu.trace_start"() <{level = 10 : i32, message = "bqk,bkd->bqd"}> : () -> ()
    %cst_88 = arith.constant dense<0.000000e+00> : vector<2x8x8xf32>
    %288 = tpu.matmul %287, %275, %cst_88 {dimension_numbers = #tpu.dot_dimension_numbers<[2], [1], [1], [2], [0, 0, 0, 1, 1, 2], [0], [0]>} : vector<2x8x8xf32>, vector<2x8x8xf32>, vector<2x8x8xf32> -> vector<2x8x8xf32>
    "tpu.trace_stop"() : () -> ()
    %c224 = arith.constant 224 : index
    %c0_89 = arith.constant 0 : index
    %289 = vector.load %arg2[%c224, %c0_89] : memref<456x128xf32, #tpu.memory_space<vmem>>, vector<8x32xf32>
    %290 = vector.shape_cast %288 : vector<2x8x8xf32> to vector<16x8xf32>
    %cst_90 = arith.constant dense<0.000000e+00> : vector<16x32xf32>
    %291 = tpu.matmul %290, %289, %cst_90 {dimension_numbers = #tpu.dot_dimension_numbers<[1], [0], [0], [1], [0, 0, 1, 1], [], []>} : vector<16x8xf32>, vector<8x32xf32>, vector<16x32xf32> -> vector<16x32xf32>
    %292 = arith.addf %272, %291 : vector<16x32xf32>
    %293 = vector.extract_strided_slice %231 {offsets = [0, 0, 24], sizes = [2, 8, 8], strides = [1, 1, 1]} : vector<2x8x96xf32> to vector<2x8x8xf32>
    %294 = vector.extract_strided_slice %231 {offsets = [0, 0, 56], sizes = [2, 8, 8], strides = [1, 1, 1]} : vector<2x8x96xf32> to vector<2x8x8xf32>
    %295 = vector.extract_strided_slice %231 {offsets = [0, 0, 88], sizes = [2, 8, 8], strides = [1, 1, 1]} : vector<2x8x96xf32> to vector<2x8x8xf32>
    "tpu.trace_start"() <{level = 10 : i32, message = "bqd,bkd->bqk"}> : () -> ()
    %cst_91 = arith.constant dense<0.000000e+00> : vector<2x8x8xf32>
    %296 = tpu.matmul %293, %294, %cst_91 {dimension_numbers = #tpu.dot_dimension_numbers<[2], [2], [1], [1], [0, 0, 0, 1, 1, 1], [0], [0]>} : vector<2x8x8xf32>, vector<2x8x8xf32>, vector<2x8x8xf32> -> vector<2x8x8xf32>
    "tpu.trace_stop"() : () -> ()
    %297 = arith.addf %296, %44 : vector<2x8x8xf32>
    %cst_92 = arith.constant dense<0xFF800000> : vector<2x8xf32>
    %298 = vector.multi_reduction <maximumf>, %297, %cst_92 [2] : vector<2x8x8xf32> to vector<2x8xf32>
    %299 = vector.shape_cast %298 : vector<2x8xf32> to vector<2x8x1xf32>
    %300 = vector.broadcast %299 : vector<2x8x1xf32> to vector<2x8x8xf32>
    %301 = arith.subf %297, %300 : vector<2x8x8xf32>
    %302 = math.exp %301 : vector<2x8x8xf32>
    %cst_93 = arith.constant dense<0.000000e+00> : vector<2x8xf32>
    %303 = vector.multi_reduction <add>, %302, %cst_93 [2] : vector<2x8x8xf32> to vector<2x8xf32>
    %304 = vector.shape_cast %303 : vector<2x8xf32> to vector<2x8x1xf32>
    %305 = tpu.reciprocal %304 {approx = true} : vector<2x8x1xf32> -> vector<2x8x1xf32>
    %306 = vector.broadcast %305 : vector<2x8x1xf32> to vector<2x8x8xf32>
    %307 = arith.mulf %302, %306 : vector<2x8x8xf32>
    "tpu.trace_start"() <{level = 10 : i32, message = "bqk,bkd->bqd"}> : () -> ()
    %cst_94 = arith.constant dense<0.000000e+00> : vector<2x8x8xf32>
    %308 = tpu.matmul %307, %295, %cst_94 {dimension_numbers = #tpu.dot_dimension_numbers<[2], [1], [1], [2], [0, 0, 0, 1, 1, 2], [0], [0]>} : vector<2x8x8xf32>, vector<2x8x8xf32>, vector<2x8x8xf32> -> vector<2x8x8xf32>
    "tpu.trace_stop"() : () -> ()
    %c232 = arith.constant 232 : index
    %c0_95 = arith.constant 0 : index
    %309 = vector.load %arg2[%c232, %c0_95] : memref<456x128xf32, #tpu.memory_space<vmem>>, vector<8x32xf32>
    %310 = vector.shape_cast %308 : vector<2x8x8xf32> to vector<16x8xf32>
    %cst_96 = arith.constant dense<0.000000e+00> : vector<16x32xf32>
    %311 = tpu.matmul %310, %309, %cst_96 {dimension_numbers = #tpu.dot_dimension_numbers<[1], [0], [0], [1], [0, 0, 1, 1], [], []>} : vector<16x8xf32>, vector<8x32xf32>, vector<16x32xf32> -> vector<16x32xf32>
    %312 = arith.addf %292, %311 : vector<16x32xf32>
    %c449 = arith.constant 449 : index
    %c0_97 = arith.constant 0 : index
    %313 = vector.load %arg2[%c449, %c0_97] : memref<456x128xf32, #tpu.memory_space<vmem>>, vector<1x32xf32>
    %314 = vector.shape_cast %313 : vector<1x32xf32> to vector<32xf32>
    %315 = vector.shape_cast %314 : vector<32xf32> to vector<1x32xf32>
    %316 = vector.broadcast %315 : vector<1x32xf32> to vector<16x32xf32>
    %317 = arith.addf %312, %316 : vector<16x32xf32>
    %318 = arith.addf %223, %317 : vector<16x32xf32>
    %c450 = arith.constant 450 : index
    %c0_98 = arith.constant 0 : index
    %319 = vector.load %arg2[%c450, %c0_98] : memref<456x128xf32, #tpu.memory_space<vmem>>, vector<1x32xf32>
    %320 = vector.shape_cast %319 : vector<1x32xf32> to vector<32xf32>
    %c451 = arith.constant 451 : index
    %c0_99 = arith.constant 0 : index
    %321 = vector.load %arg2[%c451, %c0_99] : memref<456x128xf32, #tpu.memory_space<vmem>>, vector<1x32xf32>
    %322 = vector.shape_cast %321 : vector<1x32xf32> to vector<32xf32>
    %cst_100 = arith.constant dense<0.000000e+00> : vector<16xf32>
    %323 = vector.multi_reduction <add>, %318, %cst_100 [1] : vector<16x32xf32> to vector<16xf32>
    %324 = vector.shape_cast %323 : vector<16xf32> to vector<16x1xf32>
    %cst_101 = arith.constant 3.200000e+01 : f32
    %325 = vector.broadcast %cst_101 : f32 to vector<16x1xf32>
    %326 = arith.divf %324, %325 : vector<16x1xf32>
    %327 = arith.mulf %318, %318 : vector<16x32xf32>
    %cst_102 = arith.constant dense<0.000000e+00> : vector<16xf32>
    %328 = vector.multi_reduction <add>, %327, %cst_102 [1] : vector<16x32xf32> to vector<16xf32>
    %329 = vector.shape_cast %328 : vector<16xf32> to vector<16x1xf32>
    %cst_103 = arith.constant 3.200000e+01 : f32
    %330 = vector.broadcast %cst_103 : f32 to vector<16x1xf32>
    %331 = arith.divf %329, %330 : vector<16x1xf32>
    %332 = arith.mulf %326, %326 : vector<16x1xf32>
    %333 = arith.subf %331, %332 : vector<16x1xf32>
    %334 = vector.broadcast %326 : vector<16x1xf32> to vector<16x32xf32>
    %335 = arith.subf %318, %334 : vector<16x32xf32>
    %cst_104 = arith.constant 9.99999996E-13 : f32
    %336 = vector.broadcast %cst_104 : f32 to vector<16x1xf32>
    %337 = arith.addf %333, %336 : vector<16x1xf32>
    %338 = math.rsqrt %337 : vector<16x1xf32>
    %339 = vector.broadcast %338 : vector<16x1xf32> to vector<16x32xf32>
    %340 = arith.mulf %335, %339 : vector<16x32xf32>
    %341 = vector.shape_cast %320 : vector<32xf32> to vector<1x32xf32>
    %342 = vector.broadcast %341 : vector<1x32xf32> to vector<16x32xf32>
    %343 = arith.mulf %340, %342 : vector<16x32xf32>
    %344 = vector.shape_cast %322 : vector<32xf32> to vector<1x32xf32>
    %345 = vector.broadcast %344 : vector<1x32xf32> to vector<16x32xf32>
    %346 = arith.addf %343, %345 : vector<16x32xf32>
    %c272 = arith.constant 272 : index
    %c0_105 = arith.constant 0 : index
    %347 = vector.load %arg2[%c272, %c0_105] : memref<456x128xf32, #tpu.memory_space<vmem>>, vector<32x64xf32>
    %cst_106 = arith.constant dense<0.000000e+00> : vector<16x64xf32>
    %348 = tpu.matmul %346, %347, %cst_106 {dimension_numbers = #tpu.dot_dimension_numbers<[1], [0], [0], [1], [0, 0, 1, 1], [], []>} : vector<16x32xf32>, vector<32x64xf32>, vector<16x64xf32> -> vector<16x64xf32>
    %c452 = arith.constant 452 : index
    %c0_107 = arith.constant 0 : index
    %349 = vector.load %arg2[%c452, %c0_107] : memref<456x128xf32, #tpu.memory_space<vmem>>, vector<1x64xf32>
    %350 = vector.shape_cast %349 : vector<1x64xf32> to vector<64xf32>
    %351 = vector.shape_cast %350 : vector<64xf32> to vector<1x64xf32>
    %352 = vector.broadcast %351 : vector<1x64xf32> to vector<16x64xf32>
    %353 = arith.addf %348, %352 : vector<16x64xf32>
    %354 = arith.mulf %353, %353 : vector<16x64xf32>
    %355 = arith.mulf %353, %354 : vector<16x64xf32>
    %cst_108 = arith.constant 4.471500e-02 : f32
    %356 = vector.broadcast %cst_108 : f32 to vector<16x64xf32>
    %357 = arith.mulf %356, %355 : vector<16x64xf32>
    %358 = arith.addf %353, %357 : vector<16x64xf32>
    %cst_109 = arith.constant 0.797884583 : f32
    %359 = vector.broadcast %cst_109 : f32 to vector<16x64xf32>
    %360 = arith.mulf %359, %358 : vector<16x64xf32>
    %361 = math.tanh %360 : vector<16x64xf32>
    %cst_110 = arith.constant 1.000000e+00 : f32
    %362 = vector.broadcast %cst_110 : f32 to vector<16x64xf32>
    %363 = arith.addf %362, %361 : vector<16x64xf32>
    %cst_111 = arith.constant 5.000000e-01 : f32
    %364 = vector.broadcast %cst_111 : f32 to vector<16x64xf32>
    %365 = arith.mulf %364, %363 : vector<16x64xf32>
    %366 = arith.mulf %353, %365 : vector<16x64xf32>
    %c368 = arith.constant 368 : index
    %c0_112 = arith.constant 0 : index
    %367 = vector.load %arg2[%c368, %c0_112] : memref<456x128xf32, #tpu.memory_space<vmem>>, vector<64x32xf32>
    %cst_113 = arith.constant dense<0.000000e+00> : vector<16x32xf32>
    %368 = tpu.matmul %366, %367, %cst_113 {dimension_numbers = #tpu.dot_dimension_numbers<[1], [0], [0], [1], [0, 0, 1, 1], [], []>} : vector<16x64xf32>, vector<64x32xf32>, vector<16x32xf32> -> vector<16x32xf32>
    %c453 = arith.constant 453 : index
    %c0_114 = arith.constant 0 : index
    %369 = vector.load %arg2[%c453, %c0_114] : memref<456x128xf32, #tpu.memory_space<vmem>>, vector<1x32xf32>
    %370 = vector.shape_cast %369 : vector<1x32xf32> to vector<32xf32>
    %371 = vector.shape_cast %370 : vector<32xf32> to vector<1x32xf32>
    %372 = vector.broadcast %371 : vector<1x32xf32> to vector<16x32xf32>
    %373 = arith.addf %368, %372 : vector<16x32xf32>
    %374 = arith.addf %346, %373 : vector<16x32xf32>
    %c454 = arith.constant 454 : index
    %c0_115 = arith.constant 0 : index
    %375 = vector.load %arg2[%c454, %c0_115] : memref<456x128xf32, #tpu.memory_space<vmem>>, vector<1x32xf32>
    %376 = vector.shape_cast %375 : vector<1x32xf32> to vector<32xf32>
    %c455 = arith.constant 455 : index
    %c0_116 = arith.constant 0 : index
    %377 = vector.load %arg2[%c455, %c0_116] : memref<456x128xf32, #tpu.memory_space<vmem>>, vector<1x32xf32>
    %378 = vector.shape_cast %377 : vector<1x32xf32> to vector<32xf32>
    %cst_117 = arith.constant dense<0.000000e+00> : vector<16xf32>
    %379 = vector.multi_reduction <add>, %374, %cst_117 [1] : vector<16x32xf32> to vector<16xf32>
    %380 = vector.shape_cast %379 : vector<16xf32> to vector<16x1xf32>
    %cst_118 = arith.constant 3.200000e+01 : f32
    %381 = vector.broadcast %cst_118 : f32 to vector<16x1xf32>
    %382 = arith.divf %380, %381 : vector<16x1xf32>
    %383 = arith.mulf %374, %374 : vector<16x32xf32>
    %cst_119 = arith.constant dense<0.000000e+00> : vector<16xf32>
    %384 = vector.multi_reduction <add>, %383, %cst_119 [1] : vector<16x32xf32> to vector<16xf32>
    %385 = vector.shape_cast %384 : vector<16xf32> to vector<16x1xf32>
    %cst_120 = arith.constant 3.200000e+01 : f32
    %386 = vector.broadcast %cst_120 : f32 to vector<16x1xf32>
    %387 = arith.divf %385, %386 : vector<16x1xf32>
    %388 = arith.mulf %382, %382 : vector<16x1xf32>
    %389 = arith.subf %387, %388 : vector<16x1xf32>
    %390 = vector.broadcast %382 : vector<16x1xf32> to vector<16x32xf32>
    %391 = arith.subf %374, %390 : vector<16x32xf32>
    %cst_121 = arith.constant 9.99999996E-13 : f32
    %392 = vector.broadcast %cst_121 : f32 to vector<16x1xf32>
    %393 = arith.addf %389, %392 : vector<16x1xf32>
    %394 = math.rsqrt %393 : vector<16x1xf32>
    %395 = vector.broadcast %394 : vector<16x1xf32> to vector<16x32xf32>
    %396 = arith.mulf %391, %395 : vector<16x32xf32>
    %397 = vector.shape_cast %376 : vector<32xf32> to vector<1x32xf32>
    %398 = vector.broadcast %397 : vector<1x32xf32> to vector<16x32xf32>
    %399 = arith.mulf %396, %398 : vector<16x32xf32>
    %400 = vector.shape_cast %378 : vector<32xf32> to vector<1x32xf32>
    %401 = vector.broadcast %400 : vector<1x32xf32> to vector<16x32xf32>
    %402 = arith.addf %399, %401 : vector<16x32xf32>
    %c80 = arith.constant 80 : index
    %c0_122 = arith.constant 0 : index
    %403 = vector.load %arg2[%c80, %c0_122] : memref<456x128xf32, #tpu.memory_space<vmem>>, vector<32x128xf32>
    %cst_123 = arith.constant dense<0.000000e+00> : vector<16x128xf32>
    %404 = tpu.matmul %402, %403, %cst_123 {dimension_numbers = #tpu.dot_dimension_numbers<[1], [0], [0], [1], [0, 0, 1, 1], [], []>} : vector<16x32xf32>, vector<32x128xf32>, vector<16x128xf32> -> vector<16x128xf32>
    %c432 = arith.constant 432 : index
    %c0_124 = arith.constant 0 : index
    %405 = vector.load %arg2[%c432, %c0_124] : memref<456x128xf32, #tpu.memory_space<vmem>>, vector<1x128xf32>
    %406 = vector.shape_cast %405 : vector<1x128xf32> to vector<128xf32>
    %407 = vector.shape_cast %406 : vector<128xf32> to vector<1x128xf32>
    %408 = vector.broadcast %407 : vector<1x128xf32> to vector<16x128xf32>
    %409 = arith.addf %404, %408 : vector<16x128xf32>
    %c0_125 = arith.constant 0 : index
    %c0_126 = arith.constant 0 : index
    %410 = vector.load %arg3[%c0_125, %c0_126] : memref<16x128xf32, #tpu.memory_space<vmem>>, vector<16x128xf32>
    tpu.vector_store %arg3[%c0_125, %c0_126], %409 {strides = array<i32>} : memref<16x128xf32, #tpu.memory_space<vmem>>, vector<16x128xf32>,
    return
  }
}

</mosaic_0001>

<bundles_post_ra>
// kernel: multilabel_bert_forward.1
= control target key start
LH: loop header
LB: loop body
LE: loop exit
PB: predicated region body
PF: predicated region fallthrough
CT: control target
= control target key end

     0   :  { %8 = vsyncpa [#allocation3], 0  ;;  %s2227_s15 = smov [#allocation2]   ;;  %s2228_s17 = smov 128   ;;  %s2610_s0 = inlined_call_operand.vmem [shape: s32[16,1], index: 0, kind: input, shape index: {}]   ;;  %s2611_s1 = inlined_call_operand.vmem [shape: f32[2,1,8], index: 1, kind: input, shape index: {}]   ;;  %s2612_s2 = inlined_call_operand.hbm [shape: f32[456,128], index: 2, kind: input, shape index: {}]   ;;  %s2613_s3 = inlined_call_operand.vmem [shape: f32[16,128], index: 3, kind: output, shape index: {}]  }
   0x1   :  { %s17_s14 = sshll.u32 %s2612_s2, 4  ;;  %s19_s16 = sshll.u32 %s2227_s15, 4  ;;  %s18_s14 = int_to_ptr.hbm [resolvable:$true] %s17_s14  ;;  %s20_s16 = int_to_ptr.vmem [resolvable:$true] %s19_s16 }
   0x2   :  { %s2229_s18 = smov 8  }
   0x3   :  { %25 = dma.hbm_to_vmem [thread:$0]  %s18_s14, 7296, %s20_s16, [#allocation3], %s2228_s17, %s2228_s17, %s2229_s18  }
   0x4   :  { %2225 = dma.done.wait [#allocation3], 7296  }
   0x5   :  { %2226 = vsyncadd [#allocation3], 4294960000  ;;  %v2230_v0 = vmov 0   ;;  %v30_v1 = vld [vmem:[%s2610_s0] sm:$0xff]  ;;  %v53_v2 = vld [vmem:[#allocation2 + $0x38] sm:$0xff]  ;;  %v32_v11 = vlaneseq  ;;  %vm56_vm0 = vcmask 523264  }
   0x6   :  { %2082 = vset.pattern.permute.xlu0 %v2230_v0  ;;  %71 = vmatpush.msra.mxu0 %v53_v2  ;;  %v52_v3 = vld [vmem:[#allocation2 + $0x30] sm:$0xff]  ;;  %v51_v4 = vld [vmem:[#allocation2 + $0x28] sm:$0xff]  ;;  %v50_v5 = vld [vmem:[#allocation2 + $0x20] sm:$0xff]  ;;  %v2231_v14 = vmov 0.0   ;;  %vm88_vm3 = vcmask 261120   ;;  %v2232_v30 = vmov 32.0  }
   0x7   :  { %35 = vperm.xlu0 %2082, %v30_v1   ;;  %v31_v6 = vld [vmem:[%s2610_s0 + $0x8] sm:$0xff]  ;;  %v49_v7 = vld [vmem:[#allocation2 + $0x18] sm:$0xff]  ;;  %v48_v8 = vld [vmem:[#allocation2 + $0x10] sm:$0xff]  ;;  %v33_v12 = vand.u32 127, %v32_v11  ;;  %2107 = vrcp.f32 %v2232_v30  ;;  %s2233_s0 = smov 96   ;;  %s2234_s22 = smov 88  }
   0x8   :  { %72 = vmatpush.msra.mxu0 %v52_v3  ;;  %v47_v9 = vld [vmem:[#allocation2 + $0x8] sm:$0xff]  ;;  %v46_v10 = vld [vmem:[#allocation2] sm:$0xff]  ;;  %v163_v40 = vld [vmem:[#allocation2 + $0x78] sm:$0xff]  ;;  %vm200_vm11 = vcmask 64512   ;;  %s2235_s27 = smov 64   ;;  %s2237_s28 = smov 80  }
   0x9   :  { %v54_v18 = vld [vmem:[#allocation2 + $0x40] sm:$0xff]  ;;  %v55_v22 = vld [vmem:[#allocation2 + $0x48] sm:$0xff]  ;;  %v162_v42 = vld [vmem:[#allocation2 + $0x70] sm:$0xff]  ;;  %s2238_s29 = smov 112   ;;  %s2239_s30 = smov 56  }
   0xa   :  { %73 = vmatpush.msra.mxu0 %v51_v4  ;;  %v165_v36 = vld [vmem:[#allocation2 + $0x88] sm:$0xff]  ;;  %v164_v38 = vld [vmem:[#allocation2 + $0x80] sm:$0xff]  ;;  %v2088_v0 = vld [vmem:[#allocation2 + $0x1b1] ss:$0 sm:$0xff]  ;;  %s2240_s4 = smov 104   ;;  %s2241_s5 = smov 72  }
   0xb   :  { %186 = vmatpush.msra.mxu1 %v165_v36  ;;  %v2089_v4 = vld [vmem:[#allocation2 + $0x1b2] ss:$0 sm:$0xff]  ;;  %s2242_s6 = smov 48   ;;  %s2243_s7 = smov 40  }
   0xc   :  { %74 = vmatpush.msra.mxu0 %v50_v5 }
   0xd   :  { %v2108_v31 = vpop.eup %2107  ;;  %187 = vmatpush.msra.mxu1 %v164_v38 }
   0xe   :  { %75 = vmatpush.msra.mxu0 %v49_v7  ;;  %v96_v32 = vmul.f32 32.0, %v2108_v31  ;;  %vm100_vm4 = vweird.f32 %v2108_v31 }
   0xf   :  { %38 = vperm.xlu0 %2082, %v31_v6   ;;  %188 = vmatpush.msra.mxu1 %v163_v40 }
  0x10   :  { %76 = vmatpush.msra.mxu0 %v48_v8  ;;  %v97_v33 = vsub.f32 1.0, %v96_v32 }
  0x11   :  { %189 = vmatpush.msra.mxu1 %v162_v42 }
  0x12   :  { %77 = vmatpush.msra.mxu0 %v47_v9  ;;  %v98_v34 = vmul.f32 %v2108_v31, %v97_v33 }
  0x14   :  { %78 = vmatpush.msra.mxu0 %v46_v10  ;;  %v99_v35 = vadd.f32 %v2108_v31, %v98_v34 }
  0x16   :  { %v2289_v39 = vsel %vm100_vm4, %v2108_v31, %v99_v35 }
  0x79   :  { %v36_v13 = vpop.permute.xlu0 %35 }
  0x7a   :  { %vm40_vm1 = vcmp.eq.s32.totalorder %v36_v13, %v33_v12 }
  0x7b   :  { %v1983_v15 = vsel %vm40_vm1, 1.0, %v2231_v14 }
  0x7c   :  { %1985 = vmatmul.msk.f32.vlgmr.msra.gmra.mxu0 %vm56_vm0, %v1983_v15  ;;  %v2090_v15 = vld [vmem:[#allocation2 + $0x1b8] ss:$0 sm:$0xff] }
  0x81   :  { %v39_v16 = vpop.permute.xlu0 %38 }
  0x82   :  { %vm41_vm2 = vcmp.eq.s32.totalorder %v39_v16, %v33_v12 }
  0x83   :  { %v1984_v17 = vsel %vm41_vm2, 1.0, %v2231_v14 }
  0x84   :  { %1986 = vmatmul.msk.f32.gmra.mxu0 %vm56_vm0, %v1984_v17 }
  0xf9   :  { %v80_v19 = vpop.f32.mrf.mxu0 }
  0xfa   :  { %v2275_v20 = vadd.f32 %v80_v19, %v54_v18 }
  0xfc   :  { %v89_v21 = vsel %vm88_vm3, %v2275_v20, 0.0  ;;  %v104_v23 = vmul.f32 %v2275_v20, %v2275_v20 }
  0xfd   :  { %90 = vadd.xlane.f32.xlu1 %v89_v21 }
  0xfe   :  { %v106_v26 = vsel %vm88_vm3, %v104_v23, 0.0 }
 0x101   :  { %v83_v24 = vpop.f32.mrf.mxu0 }
 0x102   :  { %v2281_v25 = vadd.f32 %v83_v24, %v55_v22  ;;  %v150_v22 = vld [vmem:[%s2611_s1] sm:$0x1] }
 0x103   :  { %v152_v23 = vsub.f32 1.0, %v150_v22 }
 0x104   :  { %v92_v27 = vsel %vm88_vm3, %v2281_v25, 0.0  ;;  %v105_v28 = vmul.f32 %v2281_v25, %v2281_v25 }
 0x105   :  { %107 = vadd.xlane.f32.xlu1 %v106_v26  ;;  %93 = vadd.xlane.f32.xlu2 %v92_v27  ;;  %v154_v24 = vmul.f32 -10000.0, %v152_v23 }
 0x106   :  { %v109_v29 = vsel %vm88_vm3, %v105_v28, 0.0 }
 0x107   :  { %v2327_v26 = vperm.slane %v154_v24, 0 }
 0x10d   :  { %110 = vadd.xlane.f32.xlu2 %v109_v29 }
 0x170   :  { %v91_v37 = vpop.xlane.xlu1 %90 }
 0x171   :  { %v102_v41 = vmul.f32 %v2289_v39, %v91_v37 }
 0x173   :  { %v114_v45 = vmul.f32 %v102_v41, %v102_v41  ;;  %v118_v63 = vsub.f32 %v2275_v20, %v102_v41 }
 0x178   :  { %v108_v43 = vpop.xlane.xlu1 %107  ;;  %v94_v44 = vpop.xlane.xlu2 %93 }
 0x179   :  { %v112_v46 = vmul.f32 %v108_v43, %v2289_v39  ;;  %v103_v49 = vmul.f32 %v2289_v39, %v94_v44 }
 0x17b   :  { %v116_v47 = vsub.f32 %v112_v46, %v114_v45  ;;  %v115_v51 = vmul.f32 %v103_v49, %v103_v49  ;;  %v119_v10 = vsub.f32 %v2281_v25, %v103_v49  ;;  %v151_v25 = vld [vmem:[%s2611_s1 + $0x1] sm:$0x1]  ;;  %s2236_s1 = smov 120  }
 0x17c   :  { %v153_v27 = vsub.f32 1.0, %v151_v25 }
 0x17d   :  { %v120_v48 = vadd.f32 1e-12, %v116_v47 }
 0x17e   :  { %v155_v30 = vmul.f32 -10000.0, %v153_v27 }
 0x17f   :  { %2109 = vrsqrt.f32 %v120_v48  ;;  %vm128_vm6 = vweird.f32 %v120_v48 }
 0x180   :  { %v111_v50 = vpop.xlane.xlu2 %110  ;;  %v2331_v32 = vperm.slane %v155_v30, 0  ;;  %v457_v30 = vld [vmem:[#allocation2 + $0xb8] sm:$0xff] }
 0x181   :  { %v113_v52 = vmul.f32 %v111_v50, %v2289_v39 }
 0x183   :  { %v117_v53 = vsub.f32 %v113_v52, %v115_v51 }
 0x185   :  { %v2110_v54 = vpop.eup %2109  ;;  %v121_v55 = vadd.f32 1e-12, %v117_v53 }
 0x186   :  { %v123_v56 = vmul.f32 %v2110_v54, %v120_v48  ;;  %vm129_vm5 = vweird.f32 %v2110_v54 }
 0x187   :  { %2111 = vrsqrt.f32 %v121_v55  ;;  %vm130_vm7 = vmor %vm128_vm6, %vm129_vm5  ;;  %vm138_vm9 = vweird.f32 %v121_v55 }
 0x188   :  { %v124_v57 = vmul.f32 %v2110_v54, %v123_v56 }
 0x18a   :  { %v125_v58 = vmul.f32 0.5, %v124_v57 }
 0x18c   :  { %v126_v59 = vsub.f32 1.5, %v125_v58 }
 0x18d   :  { %v2112_v60 = vpop.eup %2111 }
 0x18e   :  { %v127_v61 = vmul.f32 %v2110_v54, %v126_v59  ;;  %v133_v62 = vmul.f32 %v2112_v60, %v121_v55  ;;  %vm139_vm8 = vweird.f32 %v2112_v60  ;;  %v326_v59 = vld [vmem:[#allocation2 + $0xb0] sm:$0xff] }
 0x18f   :  { %vm140_vm10 = vmor %vm138_vm9, %vm139_vm8  ;;  %508 = vmatpush.msrb.mxu0 %v326_v59 }
 0x190   :  { %v134_v1 = vmul.f32 %v2112_v60, %v133_v62  ;;  %v131_v2 = vsel %vm130_vm7, %v2110_v54, %v127_v61 }
 0x191   :  { %v142_v3 = vmul.f32 %v131_v2, %v118_v63 }
 0x192   :  { %v135_v5 = vmul.f32 0.5, %v134_v1 }
 0x193   :  { %v145_v6 = vmul.f32 %v2088_v0, %v142_v3 }
 0x194   :  { %v136_v7 = vsub.f32 1.5, %v135_v5 }
 0x195   :  { %v2296_v8 = vadd.f32 %v2089_v4, %v145_v6 }
 0x196   :  { %v137_v9 = vmul.f32 %v2112_v60, %v136_v7 }
 0x197   :  { %1987 = vmatmul.msk.f32.vlgmr.msra.gmra.mxu1 %vm88_vm3, %v2296_v8 }
 0x198   :  { %v141_v11 = vsel %vm140_vm10, %v2112_v60, %v137_v9 }
 0x199   :  { %v143_v12 = vmul.f32 %v141_v11, %v119_v10 }
 0x19b   :  { %v146_v13 = vmul.f32 %v2088_v0, %v143_v12 }
 0x19d   :  { %v2301_v14 = vadd.f32 %v2089_v4, %v146_v13 }
 0x19f   :  { %1988 = vmatmul.msk.f32.gmra.mxu1 %vm88_vm3, %v2301_v14 }
 0x214   :  { %v191_v16 = vpop.f32.mrf.mxu1 }
 0x215   :  { %v2305_v17 = vadd.f32 %v2090_v15, %v191_v16 }
 0x217   :  { %198 = vrot.lane.b32.xlu0 %v2305_v17, %s2233_s0 }
 0x21c   :  { %v194_v18 = vpop.f32.mrf.mxu1 }
 0x21d   :  { %v2309_v19 = vadd.f32 %v2090_v15, %v194_v18 }
 0x21f   :  { %226 = vrot.lane.b32.xlu1 %v2309_v19, %s2233_s0 }
 0x227   :  { %329 = vrot.lane.b32.xlu1 %v2305_v17, %s2234_s22 }
 0x289   :  { %v199_v20 = vpop.permute.xlu0 %198 }
 0x28a   :  { %1989 = vmatpush.xpose.msk.msra.mxu2 %vm200_vm11, %v199_v20 }
 0x28d   :  { %1990 = vmatmul.msk.f32.vlgmr.msra.gmra.mxu2 %vm200_vm11, %v2305_v17 }
 0x291   :  { %v227_v21 = vpop.permute.xlu1 %226 }
 0x292   :  { %1991 = vmatpush.xpose.msk.msra.mxu3 %vm200_vm11, %v227_v21 }
 0x295   :  { %1992 = vmatmul.msk.f32.vlgmr.msra.gmra.mxu3 %vm200_vm11, %v2309_v19 }
 0x299   :  { %v330_v36 = vpop.permute.xlu1 %329 }
 0x310   :  { %v222_v28 = vpop.f32.mrf.mxu2 }
 0x311   :  { %v223_v29 = vadd.f32 %v222_v28, %v2327_v26 }
 0x313   :  { %v252_v31 = vsel %vm200_vm11, %v223_v29, -inf }
 0x314   :  { %253 = vmax.xlane.f32.xlu2 %v252_v31 }
 0x318   :  { %v249_v33 = vpop.f32.mrf.mxu3 }
 0x319   :  { %v250_v34 = vadd.f32 %v249_v33, %v2331_v32 }
 0x31b   :  { %v255_v35 = vsel %vm200_vm11, %v250_v34, -inf }
 0x31c   :  { %256 = vmax.xlane.f32.xlu1 %v255_v35 }
 0x32c   :  { %274 = vrot.lane.b32.xlu2 %v2305_v17, %s2235_s27 }
 0x334   :  { %327 = vrot.lane.b32.xlu2 %v2305_v17, %s2236_s1 }
 0x335   :  { %355 = vrot.lane.b32.xlu1 %v2309_v19, %s2236_s1 }
 0x33d   :  { %518 = vrot.lane.b32.xlu1 %v2305_v17, %s2237_s28 }
 0x345   :  { %516 = vrot.lane.b32.xlu1 %v2305_v17, %s2238_s29 }
 0x387   :  { %v254_v37 = vpop.xlane.xlu2 %253 }
 0x388   :  { %v258_v38 = vsub.f32 %v223_v29, %v254_v37 }
 0x38a   :  { %v260_v40 = vmul.f32 1.442695, %v258_v38 }
 0x38c   :  { %2113 = vpow2.f32 %v260_v40 }
 0x38f   :  { %v257_v41 = vpop.xlane.xlu1 %256  ;;  %v275_v42 = vpop.permute.xlu2 %274 }
 0x390   :  { %v259_v43 = vsub.f32 %v250_v34, %v257_v41  ;;  %295 = vmatpush.msrb.mxu2 %v275_v42 }
 0x392   :  { %1995 = vmatpush.xpose.msk.msra.mxu2 %vm200_vm11, %v330_v36  ;;  %v2114_v44 = vpop.eup %2113  ;;  %v262_v45 = vmul.f32 1.442695, %v259_v43 }
 0x393   :  { %v264_v46 = vsel %vm200_vm11, %v2114_v44, 0.0 }
 0x394   :  { %2115 = vpow2.f32 %v262_v45  ;;  %265 = vadd.xlane.f32.xlu0 %v264_v46 }
 0x397   :  { %v328_v49 = vpop.permute.xlu2 %327 }
 0x39a   :  { %v2116_v47 = vpop.eup %2115 }
 0x39b   :  { %v267_v48 = vsel %vm200_vm11, %v2116_v47, 0.0 }
 0x39c   :  { %268 = vadd.xlane.f32.xlu2 %v267_v48 }
 0x3a7   :  { %v356_v58 = vpop.permute.xlu1 %355 }
 0x3a8   :  { %300 = vrot.lane.b32.xlu0 %v2309_v19, %s2235_s27 }
 0x3af   :  { %v519_v15 = vpop.permute.xlu1 %518 }
 0x3b0   :  { %357 = vrot.lane.b32.xlu0 %v2309_v19, %s2234_s22 }
 0x3b7   :  { %v517_v20 = vpop.permute.xlu1 %516 }
 0x407   :  { %v266_v50 = vpop.xlane.xlu0 %265 }
 0x408   :  { %2117 = vrcp.f32 %v266_v50 }
 0x40e   :  { %v2118_v51 = vpop.eup %2117 }
 0x40f   :  { %v269_v52 = vpop.xlane.xlu2 %268  ;;  %v272_v53 = vmul.f32 %v2118_v51, %v2114_v44 }
 0x410   :  { %2119 = vrcp.f32 %v269_v52 }
 0x411   :  { %1993 = vmatmul.msk.f32.vlgmr.msrb.gmra.mxu2 %vm200_vm11, %v272_v53 }
 0x416   :  { %v2120_v54 = vpop.eup %2119 }
 0x417   :  { %v273_v56 = vmul.f32 %v2120_v54, %v2116_v47 }
 0x419   :  { %1996 = vmatmul.msk.f32.vlgmr.msra.gmra.mxu2 %vm200_vm11, %v328_v49 }
 0x41a   :  { %v301_v55 = vpop.permute.xlu0 %300 }
 0x41b   :  { %321 = vmatpush.msrb.mxu3 %v301_v55 }
 0x41c   :  { %1994 = vmatmul.msk.f32.vlgmr.msrb.gmra.mxu3 %vm200_vm11, %v273_v56 }
 0x422   :  { %v358_v57 = vpop.permute.xlu0 %357 }
 0x423   :  { %1997 = vmatpush.xpose.msk.msra.mxu3 %vm200_vm11, %v358_v57 }
 0x426   :  { %1998 = vmatmul.msk.f32.vlgmr.msra.gmra.mxu3 %vm200_vm11, %v356_v58 }
 0x427   :  { %479 = vmatpush.msrb.mxu3 %v457_v30 }
 0x494   :  { %v297_v60 = vpop.f32.mrf.mxu2 }
 0x495   :  { %2003 = vmatmul.msk.f32.vlgmr.msrb.gmra.mxu0 %vm200_vm11, %v297_v60 }
 0x49c   :  { %v352_v61 = vpop.f32.mrf.mxu2 }
 0x49d   :  { %v353_v62 = vadd.f32 %v352_v61, %v2327_v26 }
 0x49f   :  { %v323_v63 = vpop.f32.mrf.mxu3  ;;  %v383_v0 = vsel %vm200_vm11, %v353_v62, -inf }
 0x4a0   :  { %384 = vmax.xlane.f32.xlu0 %v383_v0  ;;  %2004 = vmatmul.msk.f32.gmra.mxu0 %vm200_vm11, %v323_v63 }
 0x4a9   :  { %v380_v9 = vpop.f32.mrf.mxu3 }
 0x4aa   :  { %v381_v10 = vadd.f32 %v380_v9, %v2331_v32 }
 0x4ac   :  { %v386_v11 = vsel %vm200_vm11, %v381_v10, -inf }
 0x4b4   :  { %431 = vrot.lane.b32.xlu0 %v2309_v19, %s2239_s30 }
 0x4bc   :  { %546 = vrot.lane.b32.xlu0 %v2309_v19, %s2237_s28 }
 0x4c4   :  { %544 = vrot.lane.b32.xlu0 %v2309_v19, %s2238_s29 }
 0x4cc   :  { %678 = vrot.lane.b32.xlu0 %v2305_v17, %s2240_s4 }
 0x512   :  { %v2392_v36 = vpop.f32.mrf.mxu0 }
 0x513   :  { %v385_v1 = vpop.xlane.xlu0 %384 }
 0x514   :  { %v389_v2 = vsub.f32 %v353_v62, %v385_v1 }
 0x516   :  { %v391_v3 = vmul.f32 1.442695, %v389_v2 }
 0x518   :  { %2121 = vpow2.f32 %v391_v3 }
 0x51d   :  { %v2394_v38 = vpop.f32.mrf.mxu0 }
 0x51e   :  { %v2122_v4 = vpop.eup %2121 }
 0x51f   :  { %v395_v5 = vsel %vm200_vm11, %v2122_v4, 0.0 }
 0x520   :  { %396 = vadd.xlane.f32.xlu2 %v395_v5 }
 0x526   :  { %v432_v6 = vpop.permute.xlu0 %431 }
 0x527   :  { %452 = vmatpush.msrb.mxu2 %v432_v6  ;;  %v646_v6 = vld [vmem:[#allocation2 + $0xc0] sm:$0xff] }
 0x528   :  { %668 = vmatpush.msra.mxu3 %v646_v6 }
 0x52e   :  { %v547_v7 = vpop.permute.xlu0 %546 }
 0x52f   :  { %2007 = vmatpush.xpose.msk.msra.mxu2 %vm200_vm11, %v547_v7 }
 0x536   :  { %v545_v22 = vpop.permute.xlu0 %544 }
 0x538   :  { %405 = vrot.lane.b32.xlu2 %v2305_v17, %s2239_s30 }
 0x53e   :  { %v679_v28 = vpop.permute.xlu0 %678 }
 0x561   :  { %387 = vmax.xlane.f32.xlu2 %v386_v11 }
 0x579   :  { %680 = vrot.lane.b32.xlu2 %v2305_v17, %s2241_s5 }
 0x581   :  { %708 = vrot.lane.b32.xlu2 %v2309_v19, %s2241_s5 }
 0x589   :  { %706 = vrot.lane.b32.xlu2 %v2309_v19, %s2240_s4 }
 0x593   :  { %v397_v12 = vpop.xlane.xlu2 %396 }
 0x594   :  { %2123 = vrcp.f32 %v397_v12 }
 0x59a   :  { %v2124_v13 = vpop.eup %2123 }
 0x59b   :  { %v406_v16 = vpop.permute.xlu2 %405  ;;  %v403_v18 = vmul.f32 %v2124_v13, %v2122_v4 }
 0x59c   :  { %426 = vmatpush.msrb.mxu1 %v406_v16 }
 0x59d   :  { %1999 = vmatmul.msk.f32.vlgmr.msrb.gmra.mxu1 %vm200_vm11, %v403_v18 }
 0x59e   :  { %2005 = vmatpush.xpose.msk.msra.mxu1 %vm200_vm11, %v519_v15 }
 0x5a5   :  { %2006 = vmatmul.msk.f32.vlgmr.msra.gmra.mxu1 %vm200_vm11, %v517_v20 }
 0x5d4   :  { %v388_v21 = vpop.xlane.xlu2 %387 }
 0x5d5   :  { %v390_v23 = vsub.f32 %v381_v10, %v388_v21 }
 0x5d7   :  { %v393_v24 = vmul.f32 1.442695, %v390_v23 }
 0x5d9   :  { %2125 = vpow2.f32 %v393_v24 }
 0x5dc   :  { %v681_v25 = vpop.permute.xlu2 %680 }
 0x5dd   :  { %2013 = vmatpush.xpose.msk.msra.mxu0 %vm200_vm11, %v681_v25 }
 0x5df   :  { %v2126_v27 = vpop.eup %2125 }
 0x5e0   :  { %2014 = vmatmul.msk.f32.vlgmr.msra.gmra.mxu0 %vm200_vm11, %v679_v28  ;;  %v398_v29 = vsel %vm200_vm11, %v2126_v27, 0.0  ;;  %v808_v28 = vld [vmem:[#allocation2 + $0xc8] sm:$0xff] }
 0x5e1   :  { %399 = vadd.xlane.f32.xlu1 %v398_v29 }
 0x5e4   :  { %v709_v51 = vpop.permute.xlu2 %708 }
 0x5ec   :  { %v707_v52 = vpop.permute.xlu2 %706 }
 0x61a   :  { %v428_v31 = vpop.f32.mrf.mxu1 }
 0x61b   :  { %2001 = vmatmul.msk.f32.vlgmr.msrb.gmra.mxu3 %vm200_vm11, %v428_v31 }
 0x622   :  { %v541_v33 = vpop.f32.mrf.mxu1 }
 0x623   :  { %v542_v34 = vadd.f32 %v541_v33, %v2327_v26 }
 0x625   :  { %v572_v35 = vsel %vm200_vm11, %v542_v34, -inf }
 0x626   :  { %573 = vmax.xlane.f32.xlu1 %v572_v35 }
 0x63f   :  { %594 = vrot.lane.b32.xlu1 %v2305_v17, %s2242_s6 }
 0x654   :  { %v400_v37 = vpop.xlane.xlu1 %399 }
 0x655   :  { %2127 = vrcp.f32 %v400_v37 }
 0x65b   :  { %v2128_v40 = vpop.eup %2127 }
 0x65c   :  { %v404_v41 = vmul.f32 %v2128_v40, %v2126_v27 }
 0x65d   :  { %v703_v42 = vpop.f32.mrf.mxu0 }
 0x65e   :  { %v704_v43 = vadd.f32 %v703_v42, %v2327_v26  ;;  %2000 = vmatmul.msk.f32.vlgmr.msrb.gmra.mxu2 %vm200_vm11, %v404_v41 }
 0x660   :  { %v734_v44 = vsel %vm200_vm11, %v704_v43, -inf }
 0x661   :  { %735 = vmax.xlane.f32.xlu2 %v734_v44 }
 0x666   :  { %2008 = vmatmul.msk.f32.vlgmr.msra.gmra.mxu2 %vm200_vm11, %v545_v22 }
 0x699   :  { %v574_v45 = vpop.xlane.xlu1 %573 }
 0x69a   :  { %v578_v46 = vsub.f32 %v542_v34, %v574_v45 }
 0x69c   :  { %v580_v47 = vmul.f32 1.442695, %v578_v46 }
 0x69e   :  { %2129 = vpow2.f32 %v580_v47  ;;  %v481_v35 = vpop.f32.mrf.mxu3 }
 0x69f   :  { %v511_v41 = vadd.f32 %v2392_v36, %v481_v35  ;;  %v904_v36 = vld [vmem:[#allocation2 + $0x100] sm:$0xff] }
 0x6a4   :  { %v2130_v48 = vpop.eup %2129 }
 0x6a5   :  { %v584_v49 = vsel %vm200_vm11, %v2130_v48, 0.0 }
 0x6a6   :  { %585 = vadd.xlane.f32.xlu0 %v584_v49 }
 0x6b1   :  { %v595_v50 = vpop.permute.xlu1 %594 }
 0x6b2   :  { %615 = vmatpush.msrb.mxu1 %v595_v50 }
 0x6b4   :  { %2015 = vmatpush.xpose.msk.msra.mxu1 %vm200_vm11, %v709_v51 }
 0x6d4   :  { %v736_v53 = vpop.xlane.xlu2 %735 }
 0x6d5   :  { %v740_v54 = vsub.f32 %v704_v43, %v736_v53  ;;  %v2091_v43 = vld [vmem:[#allocation2 + $0x1b9] ss:$0 sm:$0xff] }
 0x6d6   :  { %v903_v53 = vld [vmem:[#allocation2 + $0xf8] sm:$0xff] }
 0x6d7   :  { %v742_v55 = vmul.f32 1.442695, %v740_v54  ;;  %v902_v54 = vld [vmem:[#allocation2 + $0xf0] sm:$0xff] }
 0x6d9   :  { %2131 = vpow2.f32 %v742_v55 }
 0x6df   :  { %v2132_v56 = vpop.eup %2131 }
 0x6e0   :  { %v746_v57 = vsel %vm200_vm11, %v2132_v56, 0.0 }
 0x6e1   :  { %v454_v58 = vpop.f32.mrf.mxu2  ;;  %747 = vadd.xlane.f32.xlu0 %v746_v57 }
 0x6e2   :  { %2002 = vmatmul.msk.f32.gmra.mxu3 %vm200_vm11, %v454_v58 }
 0x6e9   :  { %v569_v59 = vpop.f32.mrf.mxu2 }
 0x6ea   :  { %v570_v60 = vadd.f32 %v569_v59, %v2331_v32 }
 0x6ec   :  { %v575_v61 = vsel %vm200_vm11, %v570_v60, -inf }
 0x6ed   :  { %576 = vmax.xlane.f32.xlu1 %v575_v61 }
 0x706   :  { %756 = vrot.lane.b32.xlu1 %v2305_v17, %s2243_s7 }
 0x719   :  { %v586_v62 = vpop.xlane.xlu0 %585 }
 0x71a   :  { %2133 = vrcp.f32 %v586_v62 }
 0x720   :  { %v2134_v63 = vpop.eup %2133 }
 0x721   :  { %v592_v0 = vmul.f32 %v2134_v63, %v2130_v48 }
 0x723   :  { %2009 = vmatmul.msk.f32.vlgmr.msrb.gmra.mxu1 %vm200_vm11, %v592_v0 }
 0x724   :  { %830 = vmatpush.msrb.mxu1 %v808_v28  ;;  %v955_v28 = vld [vmem:[#allocation2 + $0x130] sm:$0xff] }
 0x72b   :  { %2016 = vmatmul.msk.f32.vlgmr.msra.gmra.mxu1 %vm200_vm11, %v707_v52  ;;  %v905_v52 = vld [vmem:[#allocation2 + $0x108] sm:$0xff] }
 0x754   :  { %v748_v11 = vpop.xlane.xlu0 %747 }
 0x760   :  { %v577_v1 = vpop.xlane.xlu1 %576 }
 0x761   :  { %v579_v2 = vsub.f32 %v570_v60, %v577_v1 }
 0x763   :  { %v582_v3 = vmul.f32 1.442695, %v579_v2 }
 0x765   :  { %2135 = vpow2.f32 %v582_v3  ;;  %v484_v37 = vpop.f32.mrf.mxu3 }
 0x76b   :  { %v2136_v4 = vpop.eup %2135 }
 0x76c   :  { %v587_v5 = vsel %vm200_vm11, %v2136_v4, 0.0 }
 0x76d   :  { %588 = vadd.xlane.f32.xlu0 %v587_v5 }
 0x778   :  { %v757_v18 = vpop.permute.xlu1 %756 }
 0x781   :  { %620 = vrot.lane.b32.xlu0 %v2309_v19, %s2242_s6 }
 0x7a0   :  { %v617_v17 = vpop.f32.mrf.mxu1 }
 0x7a1   :  { %2011 = vmatmul.msk.f32.vlgmr.msra.gmra.mxu3 %vm200_vm11, %v617_v17  ;;  %v2433_v17 = vld [vmem:[#allocation2 + $0x1bb] ss:$0 sm:$0xff] }
 0x7a8   :  { %v731_v7 = vpop.f32.mrf.mxu1 }
 0x7a9   :  { %v732_v9 = vadd.f32 %v731_v7, %v2331_v32 }
 0x7ab   :  { %v737_v10 = vsel %vm200_vm11, %v732_v9, -inf }
 0x7ac   :  { %738 = vmax.xlane.f32.xlu2 %v737_v10 }
 0x7c4   :  { %782 = vrot.lane.b32.xlu2 %v2309_v19, %s2243_s7 }
 0x7e0   :  { %v589_v12 = vpop.xlane.xlu0 %588 }
 0x7e1   :  { %2137 = vrcp.f32 %v589_v12 }
 0x7e2   :  { %2139 = vrcp.f32 %v748_v11  ;;  %v514_v11 = vadd.f32 %v2394_v38, %v484_v37  ;;  %v959_v38 = vld [vmem:[#allocation2 + $0x150] sm:$0xff] }
 0x7e7   :  { %v2138_v13 = vpop.eup %2137 }
 0x7e8   :  { %v593_v15 = vmul.f32 %v2138_v13, %v2136_v4  ;;  %v2140_v20 = vpop.eup %2139  ;;  %v2431_v4 = vld [vmem:[#allocation2 + $0x1ba] ss:$0 sm:$0xff] }
 0x7e9   :  { %v754_v21 = vmul.f32 %v2140_v20, %v2132_v56 }
 0x7f3   :  { %v621_v16 = vpop.permute.xlu0 %620 }
 0x7f4   :  { %641 = vmatpush.msrb.mxu2 %v621_v16 }
 0x7f5   :  { %2010 = vmatmul.msk.f32.vlgmr.msrb.gmra.mxu2 %vm200_vm11, %v593_v15 }
 0x7f6   :  { %777 = vmatpush.msra.mxu2 %v757_v18 }
 0x7f8   :  { %926 = vmatpush.msrb.mxu2 %v905_v52 }
 0x7fa   :  { %927 = vmatpush.msrb.mxu2 %v904_v36 }
 0x7fc   :  { %928 = vmatpush.msrb.mxu2 %v903_v53 }
 0x7fd   :  { %2017 = vmatmul.msk.f32.vlgmr.msra.gmra.mxu2 %vm200_vm11, %v754_v21 }
 0x7fe   :  { %929 = vmatpush.msrb.mxu2 %v902_v54 }
 0x81f   :  { %v739_v22 = vpop.xlane.xlu2 %738 }
 0x820   :  { %v741_v23 = vsub.f32 %v732_v9, %v739_v22 }
 0x822   :  { %v744_v24 = vmul.f32 1.442695, %v741_v23  ;;  %v962_v23 = vld [vmem:[#allocation2 + $0x168] sm:$0xff] }
 0x823   :  { %979 = vmatpush.msrb.mxu3 %v962_v23 }
 0x824   :  { %2141 = vpow2.f32 %v744_v24  ;;  %v670_v40 = vpop.f32.mrf.mxu3  ;;  %v961_v24 = vld [vmem:[#allocation2 + $0x160] sm:$0xff] }
 0x825   :  { %v676_v42 = vadd.f32 %v670_v40, %v511_v41  ;;  %980 = vmatpush.msrb.mxu3 %v961_v24 }
 0x827   :  { %v783_v19 = vpop.permute.xlu2 %782 }
 0x828   :  { %803 = vmatpush.msrb.mxu0 %v783_v19  ;;  %v960_v19 = vld [vmem:[#allocation2 + $0x158] sm:$0xff] }
 0x829   :  { %981 = vmatpush.msrb.mxu3 %v960_v19 }
 0x82a   :  { %v2142_v25 = vpop.eup %2141 }
 0x82b   :  { %v749_v27 = vsel %vm200_vm11, %v2142_v25, 0.0  ;;  %982 = vmatpush.msrb.mxu3 %v959_v38 }
 0x82c   :  { %750 = vadd.xlane.f32.xlu0 %v749_v27  ;;  %v957_v27 = vld [vmem:[#allocation2 + $0x140] sm:$0xff] }
 0x878   :  { %v643_v29 = vpop.f32.mrf.mxu2 }
 0x879   :  { %2012 = vmatmul.msk.f32.gmra.mxu3 %vm200_vm11, %v643_v29  ;;  %v2094_v29 = vld [vmem:[#allocation2 + $0x1bc] ss:$0 sm:$0xff] }
 0x880   :  { %v779_v30 = vpop.f32.mrf.mxu2 }
 0x881   :  { %2019 = vmatmul.msk.f32.vlgmr.msrb.gmra.mxu1 %vm200_vm11, %v779_v30 }
 0x89f   :  { %v751_v31 = vpop.xlane.xlu0 %750 }
 0x8a0   :  { %2143 = vrcp.f32 %v751_v31 }
 0x8a6   :  { %v2144_v33 = vpop.eup %2143 }
 0x8a7   :  { %v755_v34 = vmul.f32 %v2144_v33, %v2142_v25  ;;  %v958_v25 = vld [vmem:[#allocation2 + $0x148] sm:$0xff] }
 0x8a8   :  { %983 = vmatpush.msrb.mxu3 %v958_v25 }
 0x8a9   :  { %2018 = vmatmul.msk.f32.vlgmr.msrb.gmra.mxu0 %vm200_vm11, %v755_v34 }
 0x8aa   :  { %984 = vmatpush.msrb.mxu3 %v957_v27 }
 0x8fc   :  { %v673_v10 = vpop.f32.mrf.mxu3 }
 0x8fd   :  { %v677_v12 = vadd.f32 %v673_v10, %v514_v11 }
 0x8fe   :  { %v832_v44 = vpop.f32.mrf.mxu1 }
 0x8ff   :  { %v838_v45 = vadd.f32 %v832_v44, %v676_v42 }
 0x901   :  { %v842_v46 = vadd.f32 %v2091_v43, %v838_v45 }
 0x903   :  { %v844_v47 = vadd.f32 %v842_v46, %v2296_v8 }
 0x905   :  { %v848_v48 = vsel %vm88_vm3, %v844_v47, 0.0  ;;  %v856_v49 = vmul.f32 %v844_v47, %v844_v47 }
 0x906   :  { %849 = vadd.xlane.f32.xlu1 %v848_v48 }
 0x907   :  { %v858_v50 = vsel %vm88_vm3, %v856_v49, 0.0 }
 0x908   :  { %859 = vadd.xlane.f32.xlu2 %v858_v50 }
 0x926   :  { %v805_v51 = vpop.f32.mrf.mxu0 }
 0x927   :  { %2020 = vmatmul.msk.f32.gmra.mxu1 %vm200_vm11, %v805_v51 }
 0x979   :  { %v850_v55 = vpop.xlane.xlu1 %849 }
 0x97a   :  { %v854_v8 = vmul.f32 %v850_v55, %v2289_v39 }
 0x97b   :  { %v860_v56 = vpop.xlane.xlu2 %859 }
 0x97c   :  { %v866_v57 = vmul.f32 %v854_v8, %v854_v8  ;;  %v864_v58 = vmul.f32 %v860_v56, %v2289_v39  ;;  %v870_v3 = vsub.f32 %v844_v47, %v854_v8 }
 0x97e   :  { %v868_v59 = vsub.f32 %v864_v58, %v866_v57 }
 0x980   :  { %v872_v60 = vadd.f32 1e-12, %v868_v59 }
 0x982   :  { %2145 = vrsqrt.f32 %v872_v60  ;;  %vm880_vm13 = vweird.f32 %v872_v60 }
 0x988   :  { %v2146_v61 = vpop.eup %2145 }
 0x989   :  { %v875_v62 = vmul.f32 %v2146_v61, %v872_v60  ;;  %vm881_vm12 = vweird.f32 %v2146_v61 }
 0x98a   :  { %vm882_vm14 = vmor %vm880_vm13, %vm881_vm12 }
 0x98b   :  { %v876_v63 = vmul.f32 %v2146_v61, %v875_v62 }
 0x98d   :  { %v877_v0 = vmul.f32 0.5, %v876_v63 }
 0x98f   :  { %v878_v1 = vsub.f32 1.5, %v877_v0 }
 0x991   :  { %v879_v2 = vmul.f32 %v2146_v61, %v878_v1 }
 0x993   :  { %v883_v5 = vsel %vm882_vm14, %v2146_v61, %v879_v2  ;;  %v2095_v61 = vld [vmem:[#allocation2 + $0x1bd] ss:$0 sm:$0xff] }
 0x994   :  { %v894_v6 = vmul.f32 %v883_v5, %v870_v3 }
 0x996   :  { %v897_v7 = vmul.f32 %v2431_v4, %v894_v6 }
 0x998   :  { %v2437_v9 = vadd.f32 %v2433_v17, %v897_v7 }
 0x99a   :  { %2021 = vmatmul.msk.f32.vlgmr.msrb.gmra.mxu2 %vm88_vm3, %v2437_v9 }
 0x9a4   :  { %v835_v13 = vpop.f32.mrf.mxu1 }
 0x9a5   :  { %v839_v15 = vadd.f32 %v835_v13, %v677_v12 }
 0x9a7   :  { %v843_v16 = vadd.f32 %v2091_v43, %v839_v15 }
 0x9a9   :  { %v845_v18 = vadd.f32 %v843_v16, %v2301_v14  ;;  %v956_v14 = vld [vmem:[#allocation2 + $0x138] sm:$0xff] }
 0x9aa   :  { %985 = vmatpush.msrb.mxu3 %v956_v14 }
 0x9ab   :  { %v851_v20 = vsel %vm88_vm3, %v845_v18, 0.0  ;;  %v857_v21 = vmul.f32 %v845_v18, %v845_v18 }
 0x9ac   :  { %852 = vadd.xlane.f32.xlu0 %v851_v20  ;;  %986 = vmatpush.msrb.mxu3 %v955_v28  ;;  %v1053_v20 = vld [vmem:[#allocation2 + $0x98] sm:$0xff] }
 0x9ad   :  { %v861_v22 = vsel %vm88_vm3, %v857_v21, 0.0  ;;  %v1052_v21 = vld [vmem:[#allocation2 + $0x90] sm:$0xff] }
 0x9b4   :  { %862 = vadd.xlane.f32.xlu0 %v861_v22 }
 0xa1d   :  { %v931_v30 = vpop.f32.mrf.mxu2 }
 0xa1e   :  { %v932_v31 = vadd.f32 %v2094_v29, %v931_v30 }
 0xa1f   :  { %v853_v33 = vpop.xlane.xlu0 %852 }
 0xa20   :  { %v937_v34 = vmul.f32 %v932_v31, %v932_v31  ;;  %v855_v40 = vmul.f32 %v853_v33, %v2289_v39 }
 0xa22   :  { %v939_v35 = vmul.f32 %v937_v34, %v932_v31  ;;  %v867_v44 = vmul.f32 %v855_v40, %v855_v40  ;;  %v871_v56 = vsub.f32 %v845_v18, %v855_v40  ;;  %v1054_v18 = vld [vmem:[#allocation2 + $0xa0] sm:$0xff] }
 0xa24   :  { %v941_v37 = vmul.f32 0.044715, %v939_v35  ;;  %v2096_v35 = vld [vmem:[#allocation2 + $0x1be] ss:$0 sm:$0xff] }
 0xa26   :  { %v943_v41 = vadd.f32 %v941_v37, %v932_v31 }
 0xa27   :  { %v863_v42 = vpop.xlane.xlu0 %862 }
 0xa28   :  { %v945_v43 = vmul.f32 0.7978846, %v943_v41  ;;  %v865_v45 = vmul.f32 %v863_v42, %v2289_v39  ;;  %v2097_v41 = vld [vmem:[#allocation2 + $0x1bf] ss:$0 sm:$0xff] }
 0xa2a   :  { %2147 = vtanh.f32 %v945_v43  ;;  %v869_v46 = vsub.f32 %v865_v45, %v867_v44 }
 0xa2c   :  { %v873_v47 = vadd.f32 1e-12, %v869_v46 }
 0xa2e   :  { %2149 = vrsqrt.f32 %v873_v47  ;;  %vm890_vm1 = vweird.f32 %v873_v47 }
 0xa30   :  { %v2148_v48 = vpop.eup %2147 }
 0xa31   :  { %v949_v49 = vadd.f32 1.0, %v2148_v48 }
 0xa33   :  { %v951_v50 = vmul.f32 0.5, %v949_v49 }
 0xa34   :  { %v2150_v51 = vpop.eup %2149 }
 0xa35   :  { %v953_v52 = vmul.f32 %v951_v50, %v932_v31  ;;  %v885_v36 = vmul.f32 %v2150_v51, %v873_v47  ;;  %vm891_vm15 = vweird.f32 %v2150_v51  ;;  %v2098_v50 = vld [vmem:[#allocation2 + $0x1c0] ss:$0 sm:$0xff] }
 0xa36   :  { %vm892_vm2 = vmor %vm890_vm1, %vm891_vm15 }
 0xa37   :  { %v886_v53 = vmul.f32 %v2150_v51, %v885_v36  ;;  %2023 = vmatmul.msk.f32.vlgmr.msrb.gmra.mxu3 %vm56_vm0, %v953_v52 }
 0xa39   :  { %v887_v54 = vmul.f32 0.5, %v886_v53 }
 0xa3b   :  { %v888_v55 = vsub.f32 1.5, %v887_v54 }
 0xa3d   :  { %v889_v8 = vmul.f32 %v2150_v51, %v888_v55 }
 0xa3f   :  { %v893_v57 = vsel %vm892_vm2, %v2150_v51, %v889_v8 }
 0xa40   :  { %v895_v58 = vmul.f32 %v893_v57, %v871_v56 }
 0xa42   :  { %v898_v59 = vmul.f32 %v2431_v4, %v895_v58 }
 0xa44   :  { %v901_v60 = vadd.f32 %v2433_v17, %v898_v59 }
 0xa46   :  { %2022 = vmatmul.msk.f32.gmra.mxu2 %vm88_vm3, %v901_v60 }
 0xaba   :  { %v988_v62 = vpop.f32.mrf.mxu3 }
 0xabb   :  { %v989_v63 = vadd.f32 %v2095_v61, %v988_v62 }
 0xabd   :  { %v994_v0 = vadd.f32 %v989_v63, %v2437_v9  ;;  %v1055_v9 = vld [vmem:[#allocation2 + $0xa8] sm:$0xff] }
 0xabe   :  { %1076 = vmatpush.msra.mxu0 %v1055_v9 }
 0xabf   :  { %v998_v1 = vsel %vm88_vm3, %v994_v0, 0.0  ;;  %v1006_v2 = vmul.f32 %v994_v0, %v994_v0 }
 0xac0   :  { %999 = vadd.xlane.f32.xlu0 %v998_v1  ;;  %1077 = vmatpush.msra.mxu0 %v1054_v18 }
 0xac1   :  { %v1008_v3 = vsel %vm88_vm3, %v1006_v2, 0.0 }
 0xac2   :  { %1009 = vadd.xlane.f32.xlu1 %v1008_v3  ;;  %1078 = vmatpush.msra.mxu0 %v1053_v20 }
 0xac4   :  { %1079 = vmatpush.msra.mxu0 %v1052_v21 }
 0xac9   :  { %v934_v5 = vpop.f32.mrf.mxu2 }
 0xaca   :  { %v935_v6 = vadd.f32 %v2094_v29, %v934_v5 }
 0xacc   :  { %v938_v7 = vmul.f32 %v935_v6, %v935_v6 }
 0xace   :  { %v940_v4 = vmul.f32 %v938_v7, %v935_v6 }
 0xad0   :  { %v942_v10 = vmul.f32 0.044715, %v940_v4 }
 0xad2   :  { %v944_v17 = vadd.f32 %v942_v10, %v935_v6 }
 0xad4   :  { %v946_v11 = vmul.f32 0.7978846, %v944_v17 }
 0xad6   :  { %2151 = vtanh.f32 %v946_v11 }
 0xadc   :  { %v2152_v12 = vpop.eup %2151 }
 0xadd   :  { %v950_v13 = vadd.f32 1.0, %v2152_v12 }
 0xadf   :  { %v952_v15 = vmul.f32 0.5, %v950_v13 }
 0xae1   :  { %v954_v16 = vmul.f32 %v952_v15, %v935_v6 }
 0xae3   :  { %2024 = vmatmul.msk.f32.gmra.mxu3 %vm56_vm0, %v954_v16 }
 0xb33   :  { %v1000_v22 = vpop.xlane.xlu0 %999 }
 0xb34   :  { %v1004_v23 = vmul.f32 %v1000_v22, %v2289_v39 }
 0xb35   :  { %v1010_v24 = vpop.xlane.xlu1 %1009 }
 0xb36   :  { %v1016_v19 = vmul.f32 %v1004_v23, %v1004_v23  ;;  %v1014_v38 = vmul.f32 %v1010_v24, %v2289_v39  ;;  %v1020_v34 = vsub.f32 %v994_v0, %v1004_v23 }
 0xb38   :  { %v1018_v25 = vsub.f32 %v1014_v38, %v1016_v19 }
 0xb3a   :  { %v1022_v27 = vadd.f32 1e-12, %v1018_v25 }
 0xb3c   :  { %2153 = vrsqrt.f32 %v1022_v27  ;;  %vm1030_vm5 = vweird.f32 %v1022_v27 }
 0xb42   :  { %v2154_v14 = vpop.eup %2153 }
 0xb43   :  { %v1025_v28 = vmul.f32 %v2154_v14, %v1022_v27  ;;  %vm1031_vm4 = vweird.f32 %v2154_v14 }
 0xb44   :  { %vm1032_vm6 = vmor %vm1030_vm5, %vm1031_vm4 }
 0xb45   :  { %v1026_v29 = vmul.f32 %v2154_v14, %v1025_v28 }
 0xb47   :  { %v1027_v30 = vmul.f32 0.5, %v1026_v29 }
 0xb49   :  { %v1028_v31 = vsub.f32 1.5, %v1027_v30 }
 0xb4b   :  { %v1029_v33 = vmul.f32 %v2154_v14, %v1028_v31 }
 0xb4d   :  { %v1033_v37 = vsel %vm1032_vm6, %v2154_v14, %v1029_v33 }
 0xb4e   :  { %v1044_v40 = vmul.f32 %v1033_v37, %v1020_v34 }
 0xb50   :  { %v1047_v42 = vmul.f32 %v2096_v35, %v1044_v40 }
 0xb52   :  { %v2457_v43 = vadd.f32 %v2097_v41, %v1047_v42 }
 0xb54   :  { %2025 = vmatmul.msk.f32.vlgmr.msra.gmra.mxu0 %vm88_vm3, %v2457_v43 }
 0xb66   :  { %v991_v44 = vpop.f32.mrf.mxu3 }
 0xb67   :  { %v992_v45 = vadd.f32 %v2095_v61, %v991_v44 }
 0xb69   :  { %v995_v46 = vadd.f32 %v992_v45, %v901_v60 }
 0xb6b   :  { %v1001_v47 = vsel %vm88_vm3, %v995_v46, 0.0  ;;  %v1007_v48 = vmul.f32 %v995_v46, %v995_v46 }
 0xb6c   :  { %1002 = vadd.xlane.f32.xlu0 %v1001_v47 }
 0xb6d   :  { %v1011_v49 = vsel %vm88_vm3, %v1007_v48, 0.0 }
 0xb6e   :  { %1012 = vadd.xlane.f32.xlu1 %v1011_v49 }
 0xbd1   :  { %v1081_v51 = vpop.f32.mrf.mxu0 }
 0xbd2   :  { %v2463_v52 = vadd.f32 %v2098_v50, %v1081_v51 }
 0xbd4   :  { %1216 = vrot.lane.b32.xlu1 %v2463_v52, %s2236_s1  ;;  %1218 = vrot.lane.b32.xlu0 %v2463_v52, %s2234_s22 }
 0xbd5   :  { %1088 = vrot.lane.b32.xlu2 %v2463_v52, %s2233_s0 }
 0xbdc   :  { %1294 = vrot.lane.b32.xlu1 %v2463_v52, %s2239_s30 }
 0xbdf   :  { %v1003_v36 = vpop.xlane.xlu0 %1002 }
 0xbe0   :  { %v1005_v53 = vmul.f32 %v1003_v36, %v2289_v39 }
 0xbe1   :  { %v1013_v54 = vpop.xlane.xlu1 %1012 }
 0xbe2   :  { %v1017_v55 = vmul.f32 %v1005_v53, %v1005_v53  ;;  %v1015_v8 = vmul.f32 %v1013_v54, %v2289_v39  ;;  %v1021_v0 = vsub.f32 %v995_v46, %v1005_v53 }
 0xbe4   :  { %v1019_v56 = vsub.f32 %v1015_v8, %v1017_v55 }
 0xbe6   :  { %v1023_v57 = vadd.f32 1e-12, %v1019_v56  ;;  %v1215_v56 = vld [vmem:[#allocation2 + $0xd0] sm:$0xff] }
 0xbe8   :  { %2155 = vrsqrt.f32 %v1023_v57  ;;  %vm1040_vm8 = vweird.f32 %v1023_v57 }
 0xbee   :  { %v2156_v58 = vpop.eup %2155 }
 0xbef   :  { %v1035_v59 = vmul.f32 %v2156_v58, %v1023_v57  ;;  %vm1041_vm7 = vweird.f32 %v2156_v58  ;;  %v1346_v57 = vld [vmem:[#allocation2 + $0xd8] sm:$0xff] }
 0xbf0   :  { %vm1042_vm9 = vmor %vm1040_vm8, %vm1041_vm7 }
 0xbf1   :  { %v1036_v60 = vmul.f32 %v2156_v58, %v1035_v59 }
 0xbf3   :  { %v1037_v61 = vmul.f32 0.5, %v1036_v60 }
 0xbf5   :  { %v1038_v62 = vsub.f32 1.5, %v1037_v61 }
 0xbf7   :  { %v1039_v63 = vmul.f32 %v2156_v58, %v1038_v62 }
 0xbf9   :  { %v1043_v1 = vsel %vm1042_vm9, %v2156_v58, %v1039_v63 }
 0xbfa   :  { %v1045_v2 = vmul.f32 %v1043_v1, %v1021_v0 }
 0xbfc   :  { %v1048_v3 = vmul.f32 %v2096_v35, %v1045_v2 }
 0xbfe   :  { %v2475_v5 = vadd.f32 %v2097_v41, %v1048_v3 }
 0xc00   :  { %2026 = vmatmul.msk.f32.gmra.mxu0 %vm88_vm3, %v2475_v5 }
 0xc2f   :  { %v1089_v6 = vpop.permute.xlu2 %1088 }
 0xc30   :  { %2027 = vmatpush.xpose.msk.msra.mxu1 %vm200_vm11, %v1089_v6 }
 0xc33   :  { %2028 = vmatmul.msk.f32.vlgmr.msra.gmra.mxu1 %vm200_vm11, %v2463_v52 }
 0xc46   :  { %v1219_v7 = vpop.permute.xlu0 %1218  ;;  %v1217_v4 = vpop.permute.xlu1 %1216 }
 0xc47   :  { %2033 = vmatpush.xpose.msk.msrb.mxu1 %vm200_vm11, %v1219_v7 }
 0xc4a   :  { %2034 = vmatmul.msk.f32.vlgmr.msrb.gmra.mxu1 %vm200_vm11, %v1217_v4 }
 0xc4b   :  { %1368 = vmatpush.msra.mxu1 %v1346_v57 }
 0xc4e   :  { %v1295_v28 = vpop.permute.xlu1 %1294 }
 0xc7d   :  { %v1084_v10 = vpop.f32.mrf.mxu0 }
 0xc7e   :  { %v2484_v17 = vadd.f32 %v2098_v50, %v1084_v10 }
 0xc80   :  { %1115 = vrot.lane.b32.xlu2 %v2484_v17, %s2233_s0 }
 0xcb0   :  { %v1111_v11 = vpop.f32.mrf.mxu1 }
 0xcb1   :  { %v1112_v12 = vadd.f32 %v1111_v11, %v2327_v26 }
 0xcb3   :  { %v1141_v13 = vsel %vm200_vm11, %v1112_v12, -inf }
 0xcb4   :  { %1142 = vmax.xlane.f32.xlu0 %v1141_v13 }
 0xcc7   :  { %v1241_v15 = vpop.f32.mrf.mxu1 }
 0xcc8   :  { %1246 = vrot.lane.b32.xlu0 %v2484_v17, %s2234_s22  ;;  %v1242_v16 = vadd.f32 %v1241_v15, %v2327_v26 }
 0xcca   :  { %v1272_v9 = vsel %vm200_vm11, %v1242_v16, -inf }
 0xccb   :  { %1273 = vmax.xlane.f32.xlu2 %v1272_v9 }
 0xcda   :  { %v1116_v18 = vpop.permute.xlu2 %1115 }
 0xcdb   :  { %2029 = vmatpush.xpose.msk.msra.mxu2 %vm200_vm11, %v1116_v18 }
 0xcde   :  { %2030 = vmatmul.msk.f32.vlgmr.msra.gmra.mxu2 %vm200_vm11, %v2484_v17 }
 0xce3   :  { %1163 = vrot.lane.b32.xlu2 %v2463_v52, %s2235_s27 }
 0xceb   :  { %1244 = vrot.lane.b32.xlu2 %v2484_v17, %s2236_s1 }
 0xd27   :  { %v1143_v20 = vpop.xlane.xlu0 %1142 }
 0xd28   :  { %v1147_v21 = vsub.f32 %v1112_v12, %v1143_v20 }
 0xd2a   :  { %v1149_v22 = vmul.f32 1.442695, %v1147_v21 }
 0xd2c   :  { %2157 = vpow2.f32 %v1149_v22 }
 0xd32   :  { %v2158_v23 = vpop.eup %2157 }
 0xd33   :  { %v1153_v24 = vsel %vm200_vm11, %v2158_v23, 0.0 }
 0xd34   :  { %1154 = vadd.xlane.f32.xlu1 %v1153_v24 }
 0xd3a   :  { %v1247_v19 = vpop.permute.xlu0 %1246 }
 0xd3b   :  { %2035 = vmatpush.xpose.msk.msrb.mxu2 %vm200_vm11, %v1247_v19 }
 0xd3e   :  { %v1274_v38 = vpop.xlane.xlu2 %1273 }
 0xd3f   :  { %v1278_v25 = vsub.f32 %v1242_v16, %v1274_v38  ;;  %1397 = vmatpush.msra.mxu2 %v1215_v56 }
 0xd41   :  { %v1280_v27 = vmul.f32 1.442695, %v1278_v25 }
 0xd43   :  { %2159 = vpow2.f32 %v1280_v27 }
 0xd46   :  { %v1164_v14 = vpop.permute.xlu2 %1163 }
 0xd47   :  { %1184 = vmatpush.msra.mxu3 %v1164_v14 }
 0xd49   :  { %1315 = vmatpush.msrb.mxu3 %v1295_v28  ;;  %v2160_v29 = vpop.eup %2159 }
 0xd4a   :  { %v1284_v30 = vsel %vm200_vm11, %v2160_v29, 0.0 }
 0xd4b   :  { %1285 = vadd.xlane.f32.xlu0 %v1284_v30 }
 0xd4d   :  { %1405 = vrot.lane.b32.xlu1 %v2463_v52, %s2238_s29 }
 0xd4e   :  { %v1245_v31 = vpop.permute.xlu2 %1244 }
 0xd4f   :  { %2036 = vmatmul.msk.f32.vlgmr.msrb.gmra.mxu2 %vm200_vm11, %v1245_v31 }
 0xd55   :  { %1189 = vrot.lane.b32.xlu1 %v2484_v17, %s2235_s27 }
 0xd5f   :  { %1407 = vrot.lane.b32.xlu0 %v2463_v52, %s2237_s28 }
 0xd61   :  { %v1138_v33 = vpop.f32.mrf.mxu2 }
 0xd62   :  { %v1139_v34 = vadd.f32 %v1138_v33, %v2331_v32 }
 0xd64   :  { %v1144_v35 = vsel %vm200_vm11, %v1139_v34, -inf }
 0xd65   :  { %1145 = vmax.xlane.f32.xlu2 %v1144_v35  ;;  %v1535_v35 = vld [vmem:[#allocation2 + $0xe0] sm:$0xff] }
 0xd66   :  { %1557 = vmatpush.msrb.mxu1 %v1535_v35 }
 0xda7   :  { %v1155_v37 = vpop.xlane.xlu1 %1154 }
 0xda8   :  { %2161 = vrcp.f32 %v1155_v37 }
 0xdae   :  { %v2162_v40 = vpop.eup %2161 }
 0xdaf   :  { %v1161_v41 = vmul.f32 %v2162_v40, %v2158_v23 }
 0xdb1   :  { %2031 = vmatmul.msk.f32.vlgmr.msra.gmra.mxu3 %vm200_vm11, %v1161_v41 }
 0xdbe   :  { %v1286_v42 = vpop.xlane.xlu0 %1285 }
 0xdbf   :  { %v1406_v44 = vpop.permute.xlu1 %1405  ;;  %2163 = vrcp.f32 %v1286_v42 }
 0xdc5   :  { %v2164_v45 = vpop.eup %2163 }
 0xdc6   :  { %v1292_v46 = vmul.f32 %v2164_v45, %v2160_v29 }
 0xdc7   :  { %v1190_v47 = vpop.permute.xlu1 %1189 }
 0xdc8   :  { %1210 = vmatpush.msrb.mxu0 %v1190_v47  ;;  %2037 = vmatmul.msk.f32.vlgmr.msrb.gmra.mxu3 %vm200_vm11, %v1292_v46 }
 0xdd1   :  { %v1408_v48 = vpop.permute.xlu0 %1407 }
 0xdd2   :  { %v1269_v49 = vpop.f32.mrf.mxu2  ;;  %2043 = vmatpush.xpose.msk.msra.mxu3 %vm200_vm11, %v1408_v48 }
 0xdd3   :  { %v1270_v50 = vadd.f32 %v1269_v49, %v2331_v32 }
 0xdd5   :  { %2044 = vmatmul.msk.f32.vlgmr.msra.gmra.mxu3 %vm200_vm11, %v1406_v44  ;;  %v1275_v51 = vsel %vm200_vm11, %v1270_v50, -inf }
 0xdd6   :  { %1276 = vmax.xlane.f32.xlu1 %v1275_v51 }
 0xdd8   :  { %v1146_v36 = vpop.xlane.xlu2 %1145 }
 0xdd9   :  { %v1148_v53 = vsub.f32 %v1139_v34, %v1146_v36 }
 0xddb   :  { %v1151_v54 = vmul.f32 1.442695, %v1148_v53 }
 0xddd   :  { %2165 = vpow2.f32 %v1151_v54 }
 0xde3   :  { %v2166_v55 = vpop.eup %2165 }
 0xde4   :  { %v1156_v8 = vsel %vm200_vm11, %v2166_v55, 0.0 }
 0xde5   :  { %1157 = vadd.xlane.f32.xlu0 %v1156_v8 }
 0xdef   :  { %1483 = vrot.lane.b32.xlu1 %v2463_v52, %s2242_s6 }
 0xdf7   :  { %1433 = vrot.lane.b32.xlu1 %v2484_v17, %s2238_s29 }
 0xdf9   :  { %1320 = vrot.lane.b32.xlu0 %v2484_v17, %s2239_s30 }
 0xdff   :  { %1595 = vrot.lane.b32.xlu1 %v2484_v17, %s2240_s4 }
 0xe01   :  { %1569 = vrot.lane.b32.xlu0 %v2463_v52, %s2241_s5 }
 0xe34   :  { %v1186_v58 = vpop.f32.mrf.mxu3 }
 0xe35   :  { %2041 = vmatmul.msk.f32.vlgmr.msra.gmra.mxu2 %vm200_vm11, %v1186_v58 }
 0xe49   :  { %v1277_v59 = vpop.xlane.xlu1 %1276 }
 0xe4a   :  { %v1279_v60 = vsub.f32 %v1270_v50, %v1277_v59 }
 0xe4b   :  { %v1317_v61 = vpop.f32.mrf.mxu3 }
 0xe4c   :  { %v1282_v62 = vmul.f32 1.442695, %v1279_v60  ;;  %2039 = vmatmul.msk.f32.vlgmr.msra.gmra.mxu1 %vm200_vm11, %v1317_v61 }
 0xe4e   :  { %2167 = vpow2.f32 %v1282_v62 }
 0xe54   :  { %v2168_v63 = vpop.eup %2167 }
 0xe55   :  { %v1287_v0 = vsel %vm200_vm11, %v2168_v63, 0.0 }
 0xe56   :  { %1288 = vadd.xlane.f32.xlu0 %v1287_v0 }
 0xe58   :  { %v1430_v1 = vpop.f32.mrf.mxu3  ;;  %v1158_v2 = vpop.xlane.xlu0 %1157 }
 0xe59   :  { %v1431_v3 = vadd.f32 %v1430_v1, %v2327_v26  ;;  %2169 = vrcp.f32 %v1158_v2  ;;  %v2083_v1 = vpack.i.bf16 %v2484_v17, %v2463_v52 }
 0xe5b   :  { %v1461_v6 = vsel %vm200_vm11, %v1431_v3, -inf }
 0xe5c   :  { %1462 = vmax.xlane.f32.xlu2 %v1461_v6 }
 0xe5f   :  { %v2170_v7 = vpop.eup %2169 }
 0xe60   :  { %v1162_v4 = vmul.f32 %v2170_v7, %v2166_v55 }
 0xe61   :  { %v1484_v10 = vpop.permute.xlu1 %1483 }
 0xe62   :  { %2032 = vmatmul.msk.f32.vlgmr.msrb.gmra.mxu0 %vm200_vm11, %v1162_v4  ;;  %1504 = vmatpush.msrb.mxu3 %v1484_v10 }
 0xe69   :  { %v1434_v23 = vpop.permute.xlu1 %1433 }
 0xe6a   :  { %1597 = vrot.lane.b32.xlu0 %v2484_v17, %s2241_s5 }
 0xe6b   :  { %v1321_v11 = vpop.permute.xlu0 %1320 }
 0xe6c   :  { %1341 = vmatpush.msra.mxu0 %v1321_v11 }
 0xe71   :  { %v1596_v34 = vpop.permute.xlu1 %1595 }
 0xe73   :  { %v1570_v12 = vpop.permute.xlu0 %1569 }
 0xe74   :  { %1435 = vrot.lane.b32.xlu2 %v2484_v17, %s2237_s28  ;;  %2051 = vmatpush.xpose.msk.msrb.mxu2 %vm200_vm11, %v1570_v12 }
 0xeb8   :  { %v2555_v37 = vpop.f32.mrf.mxu2 }
 0xec9   :  { %v1289_v13 = vpop.xlane.xlu0 %1288 }
 0xeca   :  { %2171 = vrcp.f32 %v1289_v13 }
 0xecf   :  { %v1463_v15 = vpop.xlane.xlu2 %1462 }
 0xed0   :  { %v2172_v16 = vpop.eup %2171  ;;  %v1467_v9 = vsub.f32 %v1431_v3, %v1463_v15 }
 0xed1   :  { %v1293_v18 = vmul.f32 %v2172_v16, %v2168_v63 }
 0xed2   :  { %v1469_v20 = vmul.f32 1.442695, %v1467_v9  ;;  %v1370_v9 = vpop.f32.mrf.mxu1 }
 0xed3   :  { %2038 = vmatmul.msk.f32.vlgmr.msra.gmra.mxu0 %vm200_vm11, %v1293_v18 }
 0xed4   :  { %2173 = vpow2.f32 %v1469_v20 }
 0xed7   :  { %v1436_v21 = vpop.permute.xlu2 %1435 }
 0xed8   :  { %2045 = vmatpush.xpose.msk.msrb.mxu0 %vm200_vm11, %v1436_v21  ;;  %v1400_v21 = vadd.f32 %v2555_v37, %v1370_v9 }
 0xeda   :  { %v2174_v22 = vpop.eup %2173 }
 0xedb   :  { %2046 = vmatmul.msk.f32.vlgmr.msrb.gmra.mxu0 %vm200_vm11, %v1434_v23  ;;  %v1473_v24 = vsel %vm200_vm11, %v2174_v22, 0.0  ;;  %v2099_v23 = vld [vmem:[#allocation2 + $0x1c1] ss:$0 sm:$0xff] }
 0xedc   :  { %1474 = vadd.xlane.f32.xlu2 %v1473_v24  ;;  %v1598_v19 = vpop.permute.xlu0 %1597 }
 0xedd   :  { %2053 = vmatpush.xpose.msk.msra.mxu3 %vm200_vm11, %v1598_v19 }
 0xedf   :  { %v1212_v38 = vpop.f32.mrf.mxu0 }
 0xee0   :  { %2042 = vmatmul.msk.f32.gmra.mxu2 %vm200_vm11, %v1212_v38 }
 0xef4   :  { %1567 = vrot.lane.b32.xlu2 %v2463_v52, %s2240_s4 }
 0xf4f   :  { %v1475_v25 = vpop.xlane.xlu2 %1474 }
 0xf50   :  { %2175 = vrcp.f32 %v1475_v25  ;;  %v1343_v27 = vpop.f32.mrf.mxu0 }
 0xf51   :  { %2040 = vmatmul.msk.f32.gmra.mxu1 %vm200_vm11, %v1343_v27 }
 0xf56   :  { %v2176_v14 = vpop.eup %2175 }
 0xf57   :  { %v1481_v28 = vmul.f32 %v2176_v14, %v2174_v22  ;;  %v1568_v29 = vpop.permute.xlu2 %1567 }
 0xf58   :  { %v1458_v30 = vpop.f32.mrf.mxu0  ;;  %2052 = vmatmul.msk.f32.vlgmr.msrb.gmra.mxu2 %vm200_vm11, %v1568_v29 }
 0xf59   :  { %v1459_v31 = vadd.f32 %v1458_v30, %v2331_v32  ;;  %2047 = vmatmul.msk.f32.vlgmr.msrb.gmra.mxu3 %vm200_vm11, %v1481_v28 }
 0xf5b   :  { %v1464_v33 = vsel %vm200_vm11, %v1459_v31, -inf }
 0xf5c   :  { %1465 = vmax.xlane.f32.xlu0 %v1464_v33 }
 0xf61   :  { %2054 = vmatmul.msk.f32.vlgmr.msra.gmra.mxu3 %vm200_vm11, %v1596_v34 }
 0xf63   :  { %v2557_v44 = vpop.f32.mrf.mxu2 }
 0xfce   :  { %v1373_v18 = vpop.f32.mrf.mxu1 }
 0xfcf   :  { %v1466_v40 = vpop.xlane.xlu0 %1465  ;;  %v1403_v28 = vadd.f32 %v2557_v44, %v1373_v18  ;;  %v1793_v44 = vld [vmem:[#allocation2 + $0x120] sm:$0xff] }
 0xfd0   :  { %v1468_v41 = vsub.f32 %v1459_v31, %v1466_v40 }
 0xfd2   :  { %v1471_v42 = vmul.f32 1.442695, %v1468_v41 }
 0xfd4   :  { %2177 = vpow2.f32 %v1471_v42 }
 0xfda   :  { %v2178_v45 = vpop.eup %2177 }
 0xfdb   :  { %v1592_v46 = vpop.f32.mrf.mxu2  ;;  %v1476_v47 = vsel %vm200_vm11, %v2178_v45, 0.0 }
 0xfdc   :  { %v1593_v48 = vadd.f32 %v1592_v46, %v2327_v26  ;;  %v1506_v49 = vpop.f32.mrf.mxu3  ;;  %1477 = vadd.xlane.f32.xlu0 %v1476_v47  ;;  %v1792_v46 = vld [vmem:[#allocation2 + $0x118] sm:$0xff] }
 0xfdd   :  { %2049 = vmatmul.msk.f32.vlgmr.msrb.gmra.mxu1 %vm200_vm11, %v1506_v49 }
 0xfde   :  { %v1623_v50 = vsel %vm200_vm11, %v1593_v48, -inf }
 0xfdf   :  { %1624 = vmax.xlane.f32.xlu2 %v1623_v50 }
 0xfe4   :  { %v1620_v51 = vpop.f32.mrf.mxu3 }
 0xfe5   :  { %v1621_v36 = vadd.f32 %v1620_v51, %v2331_v32 }
 0xfe7   :  { %v1626_v53 = vsel %vm200_vm11, %v1621_v36, -inf }
 0xfe8   :  { %1627 = vmax.xlane.f32.xlu1 %v1626_v53 }
0x1001   :  { %1509 = vrot.lane.b32.xlu1 %v2484_v17, %s2242_s6  ;;  %v1697_v17 = vld [vmem:[#allocation2 + $0xe8] sm:$0xff] }
0x1002   :  { %1719 = vmatpush.msrb.mxu3 %v1697_v17 }
0x104f   :  { %v1478_v32 = vpop.xlane.xlu0 %1477 }
0x1052   :  { %v1625_v54 = vpop.xlane.xlu2 %1624 }
0x1053   :  { %v1629_v55 = vsub.f32 %v1593_v48, %v1625_v54  ;;  %v1791_v48 = vld [vmem:[#allocation2 + $0x110] sm:$0xff] }
0x1055   :  { %v1631_v8 = vmul.f32 1.442695, %v1629_v55 }
0x1057   :  { %2179 = vpow2.f32 %v1631_v8 }
0x105a   :  { %v1559_v20 = vpop.f32.mrf.mxu1 }
0x105b   :  { %v1628_v26 = vpop.xlane.xlu1 %1627  ;;  %v1565_v22 = vadd.f32 %v1559_v20, %v1400_v21  ;;  %v1851_v20 = vld [vmem:[#allocation2 + $0x1a8] sm:$0xff]  ;;  %v1850_v21 = vld [vmem:[#allocation2 + $0x1a0] sm:$0xff] }
0x105c   :  { %v1630_v56 = vsub.f32 %v1621_v36, %v1628_v26  ;;  %1868 = vmatpush.msra.mxu1 %v1851_v20 }
0x105d   :  { %v2180_v57 = vpop.eup %2179 }
0x105e   :  { %v1633_v58 = vmul.f32 1.442695, %v1630_v56  ;;  %v1635_v59 = vsel %vm200_vm11, %v2180_v57, 0.0  ;;  %1869 = vmatpush.msra.mxu1 %v1850_v21 }
0x105f   :  { %1636 = vadd.xlane.f32.xlu2 %v1635_v59 }
0x1060   :  { %2181 = vpow2.f32 %v1633_v58 }
0x1061   :  { %2183 = vrcp.f32 %v1478_v32 }
0x1066   :  { %v2182_v60 = vpop.eup %2181 }
0x1067   :  { %v1638_v61 = vsel %vm200_vm11, %v2182_v60, 0.0  ;;  %v2184_v62 = vpop.eup %2183 }
0x1068   :  { %1639 = vadd.xlane.f32.xlu0 %v1638_v61  ;;  %v1482_v63 = vmul.f32 %v2184_v62, %v2178_v45  ;;  %v1794_v45 = vld [vmem:[#allocation2 + $0x128] sm:$0xff] }
0x1073   :  { %v1510_v0 = vpop.permute.xlu1 %1509 }
0x1074   :  { %1530 = vmatpush.msra.mxu0 %v1510_v0 }
0x1075   :  { %2048 = vmatmul.msk.f32.vlgmr.msra.gmra.mxu0 %vm200_vm11, %v1482_v63 }
0x1077   :  { %2084 = vrot.lane.b32.xlu2 %v2083_v1, %s2243_s7  ;;  %v2100_v1 = vld [vmem:[#allocation2 + $0x1c2] ss:$0 sm:$0xff] }
0x10d2   :  { %v1637_v2 = vpop.xlane.xlu2 %1636 }
0x10d3   :  { %2185 = vrcp.f32 %v1637_v2 }
0x10d9   :  { %v2186_v3 = vpop.eup %2185 }
0x10da   :  { %v2085_v6 = vpop.permute.xlu2 %2084  ;;  %v1643_v11 = vmul.f32 %v2186_v3, %v2180_v57 }
0x10db   :  { %v2087_v7 = vunpack.i.h.bf16 %v2085_v6  ;;  %v2086_v4 = vunpack.i.l.bf16 %v2085_v6  ;;  %v1640_v10 = vpop.xlane.xlu0 %1639 }
0x10dc   :  { %2187 = vrcp.f32 %v1640_v10 }
0x10dd   :  { %1666 = vmatpush.msrb.mxu0 %v2086_v4  ;;  %1692 = vmatpush.msra.mxu2 %v2087_v7  ;;  %v2101_v7 = vld [vmem:[#allocation2 + $0x1c3] ss:$0 sm:$0xff] }
0x10de   :  { %2055 = vmatmul.msk.f32.vlgmr.msrb.gmra.mxu0 %vm200_vm11, %v1643_v11 }
0x10df   :  { %1815 = vmatpush.msra.mxu0 %v1794_v45 }
0x10e1   :  { %1816 = vmatpush.msra.mxu0 %v1793_v44 }
0x10e2   :  { %v2188_v12 = vpop.eup %2187 }
0x10e3   :  { %v1644_v13 = vmul.f32 %v2188_v12, %v2182_v60  ;;  %1817 = vmatpush.msra.mxu0 %v1792_v46 }
0x10e5   :  { %2056 = vmatmul.msk.f32.vlgmr.msra.gmra.mxu2 %vm200_vm11, %v1644_v13  ;;  %1818 = vmatpush.msra.mxu0 %v1791_v48 }
0x10f2   :  { %v1532_v52 = vpop.f32.mrf.mxu0 }
0x10f3   :  { %2050 = vmatmul.msk.f32.gmra.mxu1 %vm200_vm11, %v1532_v52 }
0x115b   :  { %v1668_v15 = vpop.f32.mrf.mxu0 }
0x115c   :  { %2057 = vmatmul.msk.f32.vlgmr.msrb.gmra.mxu3 %vm200_vm11, %v1668_v15 }
0x1168   :  { %v1694_v16 = vpop.f32.mrf.mxu2 }
0x1169   :  { %2058 = vmatmul.msk.f32.gmra.mxu3 %vm200_vm11, %v1694_v16 }
0x1170   :  { %v1562_v14 = vpop.f32.mrf.mxu1 }
0x1171   :  { %v1566_v30 = vadd.f32 %v1562_v14, %v1403_v28 }
0x11df   :  { %v1721_v24 = vpop.f32.mrf.mxu3 }
0x11e0   :  { %v1727_v19 = vadd.f32 %v1721_v24, %v1565_v22  ;;  %v1849_v22 = vld [vmem:[#allocation2 + $0x198] sm:$0xff]  ;;  %v1847_v24 = vld [vmem:[#allocation2 + $0x188] sm:$0xff] }
0x11e1   :  { %1870 = vmatpush.msra.mxu1 %v1849_v22 }
0x11e2   :  { %v1731_v38 = vadd.f32 %v2099_v23, %v1727_v19  ;;  %v1846_v19 = vld [vmem:[#allocation2 + $0x180] sm:$0xff] }
0x11e4   :  { %v1733_v25 = vadd.f32 %v1731_v38, %v2457_v43  ;;  %v1845_v38 = vld [vmem:[#allocation2 + $0x178] sm:$0xff] }
0x11e6   :  { %v1737_v27 = vsel %vm88_vm3, %v1733_v25, 0.0  ;;  %v1745_v29 = vmul.f32 %v1733_v25, %v1733_v25 }
0x11e7   :  { %1738 = vadd.xlane.f32.xlu0 %v1737_v27  ;;  %v2102_v27 = vld [vmem:[#allocation2 + $0x1c4] ss:$0 sm:$0xff] }
0x11e8   :  { %v1747_v34 = vsel %vm88_vm3, %v1745_v29, 0.0 }
0x11ec   :  { %v1724_v31 = vpop.f32.mrf.mxu3 }
0x11ed   :  { %v1728_v33 = vadd.f32 %v1724_v31, %v1566_v30 }
0x11ef   :  { %v1732_v35 = vadd.f32 %v2099_v23, %v1728_v33  ;;  %1748 = vadd.xlane.f32.xlu0 %v1747_v34  ;;  %v1848_v23 = vld [vmem:[#allocation2 + $0x190] sm:$0xff] }
0x11f0   :  { %1871 = vmatpush.msra.mxu1 %v1848_v23 }
0x11f1   :  { %v1734_v37 = vadd.f32 %v1732_v35, %v2475_v5 }
0x11f2   :  { %1872 = vmatpush.msra.mxu1 %v1847_v24 }
0x11f3   :  { %v1746_v40 = vmul.f32 %v1734_v37, %v1734_v37  ;;  %v1740_v43 = vsel %vm88_vm3, %v1734_v37, 0.0 }
0x11f4   :  { %1873 = vmatpush.msra.mxu1 %v1846_v19 }
0x11f5   :  { %v1750_v41 = vsel %vm88_vm3, %v1746_v40, 0.0 }
0x11f6   :  { %1751 = vadd.xlane.f32.xlu1 %v1750_v41  ;;  %1874 = vmatpush.msra.mxu1 %v1845_v38  ;;  %v2104_v38 = vld [vmem:[#allocation2 + $0x1c6] ss:$0 sm:$0xff] }
0x11f7   :  { %1741 = vadd.xlane.f32.xlu0 %v1740_v43 }
0x125a   :  { %v1739_v42 = vpop.xlane.xlu0 %1738 }
0x125b   :  { %v1743_v47 = vmul.f32 %v1739_v42, %v2289_v39 }
0x125d   :  { %v1755_v5 = vmul.f32 %v1743_v47, %v1743_v47  ;;  %v1759_v0 = vsub.f32 %v1733_v25, %v1743_v47  ;;  %v1844_v25 = vld [vmem:[#allocation2 + $0x170] sm:$0xff] }
0x125e   :  { %1875 = vmatpush.msra.mxu1 %v1844_v25 }
0x1262   :  { %v1749_v49 = vpop.xlane.xlu0 %1748 }
0x1263   :  { %v1753_v50 = vmul.f32 %v1749_v49, %v2289_v39 }
0x1265   :  { %v1757_v51 = vsub.f32 %v1753_v50, %v1755_v5 }
0x1267   :  { %v1761_v36 = vadd.f32 1e-12, %v1757_v51 }
0x1269   :  { %2189 = vrsqrt.f32 %v1761_v36  ;;  %v1752_v53 = vpop.xlane.xlu1 %1751  ;;  %vm1769_vm11 = vweird.f32 %v1761_v36 }
0x126a   :  { %v1742_v54 = vpop.xlane.xlu0 %1741  ;;  %v1754_v8 = vmul.f32 %v1752_v53, %v2289_v39 }
0x126b   :  { %v1744_v55 = vmul.f32 %v1742_v54, %v2289_v39 }
0x126d   :  { %v1756_v26 = vmul.f32 %v1744_v55, %v1744_v55  ;;  %v1760_v17 = vsub.f32 %v1734_v37, %v1744_v55 }
0x126f   :  { %v2190_v56 = vpop.eup %2189  ;;  %v1758_v57 = vsub.f32 %v1754_v8, %v1756_v26 }
0x1270   :  { %v1764_v58 = vmul.f32 %v2190_v56, %v1761_v36  ;;  %vm1770_vm10 = vweird.f32 %v2190_v56  ;;  %v2103_v36 = vld [vmem:[#allocation2 + $0x1c5] ss:$0 sm:$0xff] }
0x1271   :  { %v1762_v59 = vadd.f32 1e-12, %v1758_v57  ;;  %vm1771_vm12 = vmor %vm1769_vm11, %vm1770_vm10 }
0x1272   :  { %v1765_v60 = vmul.f32 %v2190_v56, %v1764_v58 }
0x1273   :  { %2191 = vrsqrt.f32 %v1762_v59  ;;  %vm1779_vm14 = vweird.f32 %v1762_v59 }
0x1274   :  { %v1766_v32 = vmul.f32 0.5, %v1765_v60 }
0x1276   :  { %v1767_v61 = vsub.f32 1.5, %v1766_v32 }
0x1278   :  { %v1768_v62 = vmul.f32 %v2190_v56, %v1767_v61 }
0x1279   :  { %v2192_v63 = vpop.eup %2191 }
0x127a   :  { %v1772_v2 = vsel %vm1771_vm12, %v2190_v56, %v1768_v62  ;;  %v1774_v3 = vmul.f32 %v2192_v63, %v1762_v59  ;;  %vm1780_vm13 = vweird.f32 %v2192_v63  ;;  %v1944_v62 = vld [vmem:[#allocation2 + $0x68] sm:$0xff] }
0x127b   :  { %v1783_v6 = vmul.f32 %v1772_v2, %v1759_v0  ;;  %vm1781_vm15 = vmor %vm1779_vm14, %vm1780_vm13  ;;  %1965 = vmatpush.msrb.mxu2 %v1944_v62  ;;  %v1942_v0 = vld [vmem:[#allocation2 + $0x58] sm:$0xff]  ;;  %v1941_v2 = vld [vmem:[#allocation2 + $0x50] sm:$0xff] }
0x127c   :  { %v1775_v4 = vmul.f32 %v2192_v63, %v1774_v3 }
0x127d   :  { %v1786_v10 = vmul.f32 %v2100_v1, %v1783_v6 }
0x127e   :  { %v1776_v11 = vmul.f32 0.5, %v1775_v4 }
0x127f   :  { %v1789_v12 = vadd.f32 %v2101_v7, %v1786_v10 }
0x1280   :  { %v1777_v13 = vsub.f32 1.5, %v1776_v11 }
0x1281   :  { %2059 = vmatmul.msk.f32.vlgmr.msra.gmra.mxu0 %vm88_vm3, %v1789_v12 }
0x1282   :  { %v1778_v52 = vmul.f32 %v2192_v63, %v1777_v13 }
0x1284   :  { %v1782_v15 = vsel %vm1781_vm15, %v2192_v63, %v1778_v52  ;;  %v1943_v63 = vld [vmem:[#allocation2 + $0x60] sm:$0xff] }
0x1285   :  { %v1784_v16 = vmul.f32 %v1782_v15, %v1760_v17  ;;  %1966 = vmatpush.msrb.mxu2 %v1943_v63 }
0x1287   :  { %v1787_v9 = vmul.f32 %v2100_v1, %v1784_v16  ;;  %1967 = vmatpush.msrb.mxu2 %v1942_v0 }
0x1289   :  { %v1790_v18 = vadd.f32 %v2101_v7, %v1787_v9  ;;  %1968 = vmatpush.msrb.mxu2 %v1941_v2 }
0x128b   :  { %2060 = vmatmul.msk.f32.gmra.mxu0 %vm88_vm3, %v1790_v18 }
0x12fe   :  { %v1820_v14 = vpop.f32.mrf.mxu0 }
0x12ff   :  { %v1821_v28 = vadd.f32 %v2102_v27, %v1820_v14  ;;  %v2105_v14 = vld [vmem:[#allocation2 + $0x1c7] ss:$0 sm:$0xff] }
0x1301   :  { %v1826_v29 = vmul.f32 %v1821_v28, %v1821_v28 }
0x1303   :  { %v1828_v30 = vmul.f32 %v1826_v29, %v1821_v28 }
0x1305   :  { %v1830_v31 = vmul.f32 0.044715, %v1828_v30 }
0x1307   :  { %v1832_v33 = vadd.f32 %v1830_v31, %v1821_v28 }
0x1308   :  { %v1823_v34 = vpop.f32.mrf.mxu0 }
0x1309   :  { %v1834_v35 = vmul.f32 0.7978846, %v1832_v33  ;;  %v1824_v37 = vadd.f32 %v2102_v27, %v1823_v34 }
0x130b   :  { %2193 = vtanh.f32 %v1834_v35  ;;  %v1827_v40 = vmul.f32 %v1824_v37, %v1824_v37 }
0x130d   :  { %v1829_v41 = vmul.f32 %v1827_v40, %v1824_v37 }
0x130f   :  { %v1831_v43 = vmul.f32 0.044715, %v1829_v41 }
0x1311   :  { %v2194_v42 = vpop.eup %2193  ;;  %v1833_v45 = vadd.f32 %v1831_v43, %v1824_v37 }
0x1312   :  { %v1838_v44 = vadd.f32 1.0, %v2194_v42 }
0x1313   :  { %v1835_v46 = vmul.f32 0.7978846, %v1833_v45  ;;  %v2106_v45 = vld [vmem:[#allocation2 + $0x1b0] ss:$0 sm:$0xff] }
0x1314   :  { %v1840_v47 = vmul.f32 0.5, %v1838_v44 }
0x1315   :  { %2195 = vtanh.f32 %v1835_v46 }
0x1316   :  { %v1842_v48 = vmul.f32 %v1840_v47, %v1821_v28 }
0x1318   :  { %2061 = vmatmul.msk.f32.vlgmr.msra.gmra.mxu1 %vm56_vm0, %v1842_v48 }
0x131b   :  { %v2196_v49 = vpop.eup %2195 }
0x131c   :  { %v1839_v5 = vadd.f32 1.0, %v2196_v49 }
0x131e   :  { %v1841_v50 = vmul.f32 0.5, %v1839_v5 }
0x1320   :  { %v1843_v51 = vmul.f32 %v1841_v50, %v1824_v37 }
0x1322   :  { %2062 = vmatmul.msk.f32.gmra.mxu1 %vm56_vm0, %v1843_v51 }
0x1395   :  { %v1877_v53 = vpop.f32.mrf.mxu1 }
0x1396   :  { %v1878_v54 = vadd.f32 %v2103_v36, %v1877_v53 }
0x1398   :  { %v1883_v55 = vadd.f32 %v1878_v54, %v1789_v12 }
0x139a   :  { %v1887_v8 = vsel %vm88_vm3, %v1883_v55, 0.0  ;;  %v1895_v26 = vmul.f32 %v1883_v55, %v1883_v55 }
0x139b   :  { %1888 = vadd.xlane.f32.xlu2 %v1887_v8 }
0x139c   :  { %v1897_v56 = vsel %vm88_vm3, %v1895_v26, 0.0 }
0x139d   :  { %1898 = vadd.xlane.f32.xlu0 %v1897_v56 }
0x139f   :  { %v1880_v57 = vpop.f32.mrf.mxu1 }
0x13a0   :  { %v1881_v58 = vadd.f32 %v2103_v36, %v1880_v57 }
0x13a2   :  { %v1884_v59 = vadd.f32 %v1881_v58, %v1790_v18 }
0x13a4   :  { %v1890_v60 = vsel %vm88_vm3, %v1884_v59, 0.0  ;;  %v1896_v32 = vmul.f32 %v1884_v59, %v1884_v59 }
0x13a5   :  { %1891 = vadd.xlane.f32.xlu0 %v1890_v60 }
0x13a6   :  { %v1900_v61 = vsel %vm88_vm3, %v1896_v32, 0.0 }
0x13ad   :  { %1901 = vadd.xlane.f32.xlu0 %v1900_v61 }
0x140e   :  { %v1889_v1 = vpop.xlane.xlu2 %1888 }
0x140f   :  { %v1893_v3 = vmul.f32 %v1889_v1, %v2289_v39 }
0x1410   :  { %v1899_v6 = vpop.xlane.xlu0 %1898 }
0x1411   :  { %v1905_v7 = vmul.f32 %v1893_v3, %v1893_v3  ;;  %v1903_v4 = vmul.f32 %v1899_v6, %v2289_v39  ;;  %v1909_v19 = vsub.f32 %v1883_v55, %v1893_v3 }
0x1413   :  { %v1907_v10 = vsub.f32 %v1903_v4, %v1905_v7 }
0x1415   :  { %v1911_v11 = vadd.f32 1e-12, %v1907_v10 }
0x1417   :  { %2197 = vrsqrt.f32 %v1911_v11  ;;  %vm1919_vm1 = vweird.f32 %v1911_v11 }
0x1418   :  { %v1892_v12 = vpop.xlane.xlu0 %1891 }
0x1419   :  { %v1894_v52 = vmul.f32 %v1892_v12, %v2289_v39 }
0x141b   :  { %v1906_v9 = vmul.f32 %v1894_v52, %v1894_v52  ;;  %v1910_v37 = vsub.f32 %v1884_v59, %v1894_v52 }
0x141d   :  { %v2198_v13 = vpop.eup %2197 }
0x141e   :  { %v1914_v17 = vmul.f32 %v2198_v13, %v1911_v11  ;;  %vm1920_vm0 = vweird.f32 %v2198_v13 }
0x141f   :  { %vm1921_vm2 = vmor %vm1919_vm1, %vm1920_vm0 }
0x1420   :  { %v1915_v15 = vmul.f32 %v2198_v13, %v1914_v17  ;;  %v1902_v16 = vpop.xlane.xlu0 %1901 }
0x1421   :  { %v1904_v18 = vmul.f32 %v1902_v16, %v2289_v39 }
0x1422   :  { %v1916_v20 = vmul.f32 0.5, %v1915_v15 }
0x1423   :  { %v1908_v21 = vsub.f32 %v1904_v18, %v1906_v9 }
0x1424   :  { %v1917_v22 = vsub.f32 1.5, %v1916_v20 }
0x1425   :  { %v1912_v23 = vadd.f32 1e-12, %v1908_v21 }
0x1426   :  { %v1918_v24 = vmul.f32 %v2198_v13, %v1917_v22 }
0x1427   :  { %2199 = vrsqrt.f32 %v1912_v23  ;;  %vm1929_vm5 = vweird.f32 %v1912_v23 }
0x1428   :  { %v1922_v25 = vsel %vm1921_vm2, %v2198_v13, %v1918_v24 }
0x1429   :  { %v1933_v27 = vmul.f32 %v1922_v25, %v1909_v19 }
0x142b   :  { %v1936_v28 = vmul.f32 %v2104_v38, %v1933_v27 }
0x142d   :  { %v2200_v29 = vpop.eup %2199  ;;  %v1939_v30 = vadd.f32 %v2105_v14, %v1936_v28 }
0x142e   :  { %v1924_v31 = vmul.f32 %v2200_v29, %v1912_v23  ;;  %vm1930_vm4 = vweird.f32 %v2200_v29 }
0x142f   :  { %2063 = vmatmul.msk.f32.vlgmr.msrb.gmra.mxu2 %vm88_vm3, %v1939_v30  ;;  %vm1931_vm6 = vmor %vm1929_vm5, %vm1930_vm4 }
0x1430   :  { %v1925_v39 = vmul.f32 %v2200_v29, %v1924_v31 }
0x1432   :  { %v1926_v33 = vmul.f32 0.5, %v1925_v39 }
0x1434   :  { %v1927_v34 = vsub.f32 1.5, %v1926_v33 }
0x1436   :  { %v1928_v35 = vmul.f32 %v2200_v29, %v1927_v34 }
0x1438   :  { %v1932_v40 = vsel %vm1931_vm6, %v2200_v29, %v1928_v35 }
0x1439   :  { %v1934_v41 = vmul.f32 %v1932_v40, %v1910_v37 }
0x143b   :  { %v1937_v43 = vmul.f32 %v2104_v38, %v1934_v41 }
0x143d   :  { %v1940_v42 = vadd.f32 %v2105_v14, %v1937_v43 }
0x143f   :  { %2064 = vmatmul.msk.f32.gmra.mxu2 %vm88_vm3, %v1940_v42 }
0x14b2   :  { %v1970_v44 = vpop.f32.mrf.mxu2 }
0x14b3   :  { %v1971_v46 = vadd.f32 %v2106_v45, %v1970_v44 }
0x14b5   :  { %1976 = vst [vmem:[%s2613_s3] sm:$0xff] %v1971_v46 }
0x14c2   :  { %v1973_v47 = vpop.f32.mrf.mxu2 }
0x14c3   :  { %v1974_v48 = vadd.f32 %v2106_v45, %v1973_v47 }
0x14c5   :  { %1977 = vst [vmem:[%s2613_s3 + $0x8] sm:$0xff] %v1974_v48 }
0x14c6   :  { %1982 = vsyncpa [#allocation3], 1 }

</bundles_post_ra>
